<compile_context>
chip_gen: v5e
topology: v5e:2x2
jax: 0.10.0
libtpu: 0.0.40
codegen_flags: <defaults>
</compile_context>

<pallas_src>
import jax
import jax.numpy as jnp
from jax.experimental import pallas as pl
from jax.experimental.pallas import tpu as pltpu


# ----------------------------------------------------------------------------
# Pallas kernel: homography warp of patch pixel coordinates (lane axis = points)
# ----------------------------------------------------------------------------
def _warp_kernel(h_ref, hvalid_ref, pix_ref, out_ref):
    # h_ref      : (1, 9, TN)   flattened per-point homography for this camera.
    #              Rows 0..2 (x row) are pre-scaled by 2/(W-1), rows 3..5 (y row)
    #              by 2/(H-1); row 6..8 is the untouched depth row.
    # hvalid_ref : (1, 1, TN)   per-(camera, point) validity (0/1 float)
    # pix_ref    : (2, P2p, TN) patch pixel coords (x row, y row); homog. 1 implicit
    # out_ref    : (1, 2, P2p, TN) normalized grid coords; +2.0 sentinel if invalid
    h = h_ref[0]          # (9, TN)
    p0 = pix_ref[0]       # (P2p, TN)  x
    p1 = pix_ref[1]       # (P2p, TN)  y

    # warped = H @ [x, y, 1]^T  -> sublane-broadcast MACs on the VPU
    w0 = h[0:1, :] * p0 + h[1:2, :] * p1 + h[2:3, :]
    w1 = h[3:4, :] * p0 + h[4:5, :] * p1 + h[5:6, :]
    w2 = h[6:7, :] * p0 + h[7:8, :] * p1 + h[8:9, :]

    pos = w2 >= 0.2                                # positive_depth_mask
    w2m = jnp.where(pos, w2, 0.0) + 1e-6
    inv = pl.reciprocal(w2m, approx=True)          # EUP slot, off the VALU path
    inv = inv * (2.0 - w2m * inv)                  # one NR step: f32-accurate, free

    # px = ((w0/(w2+eps)) / (W-1) - 0.5) * 2 ; the 2/(W-1) scale is pre-folded into H
    px = w0 * inv - 1.0
    py = w1 * inv - 1.0

    hv = hvalid_ref[0] > 0.5                       # (1, TN), broadcasts over sublanes
    valid = (px > -1.0) & (px < 1.0) & (py > -1.0) & (py < 1.0) & pos & hv

    # Sentinel +2.0 on invalid points: downstream validity reconstruction is exact,
    # the zeros-padded bilinear gather returns rgb = 0 there, and any NaNs from
    # masked-out geometry never reach the gather.
    out_ref[0, 0, :, :] = jnp.where(valid, px, 2.0)
    out_ref[0, 1, :, :] = jnp.where(valid, py, 2.0)


def warp_patches(h_lanes, hvalid, pix, point_tile=2048):
    """Apply per-(camera, point) homographies to patch pixel coords.

    h_lanes : (n_cam, 9, n_pts) float32  lane-dense flattened homographies
              (rows 0..5 pre-scaled by 2/(W-1), 2/(H-1))
    hvalid  : (n_cam, 1, n_pts) float32  0/1 validity (H_valid & ray mask)
    pix     : (2, P2_pad, n_pts) float32 patch pixel coords (x, y)
    returns coords (n_cam, 2, P2_pad, n_pad) normalized grid coords in [-1,1]
            with +2.0 sentinel at invalid positions.
    """
    n_cam, _, n_pts = h_lanes.shape
    P2_pad = pix.shape[1]

    # Pad the point axis to a multiple of 128 and pick the tile size.
    n_pad = ((n_pts + 127) // 128) * 128
    TN = max(128, (min(point_tile, n_pad) // 128) * 128)
    n_pad = ((n_pad + TN - 1) // TN) * TN
    pad = n_pad - n_pts
    if pad:
        h_lanes = jnp.pad(h_lanes, ((0, 0), (0, 0), (0, pad)))
        hvalid = jnp.pad(hvalid, ((0, 0), (0, 0), (0, pad)))
        pix = jnp.pad(pix, ((0, 0), (0, 0), (0, pad)))

    # Points outer (sharded across TensorCores on v7x), cameras inner so the
    # pix block index is constant along the inner loop and is not re-DMA'd.
    grid = (n_pad // TN, n_cam)
    coords = pl.pallas_call(
        _warp_kernel,
        out_shape=jax.ShapeDtypeStruct((n_cam, 2, P2_pad, n_pad), jnp.float32),
        grid_spec=pltpu.PrefetchScalarGridSpec(
            num_scalar_prefetch=0,
            grid=grid,
            in_specs=[
                pl.BlockSpec((1, 9, TN), lambda p, c: (c, 0, p)),
                pl.BlockSpec((1, 1, TN), lambda p, c: (c, 0, p)),
                pl.BlockSpec((2, P2_pad, TN), lambda p, c: (0, 0, p)),  # reused over c
            ],
            out_specs=pl.BlockSpec((1, 2, P2_pad, TN), lambda p, c: (c, 0, 0, p)),
        ),
        compiler_params=pltpu.CompilerParams(
            dimension_semantics=("parallel", "arbitrary")),
    )(h_lanes, hvalid, pix)
    return coords


# ----------------------------------------------------------------------------
# Plain-JAX glue (fixed-shape versions of the torch helpers)
# ----------------------------------------------------------------------------
def get_intersection_points_all(starts, origins, directions, sdf, normal, in_image_mask):
    """Same math as the torch reference, but keeps all rays and returns a mask."""
    n_rays, n_samples = sdf.shape[0], sdf.shape[1]
    s = sdf[..., 0]                                                     # (R, S)
    sign_matrix = jnp.concatenate(
        [jnp.sign(s[:, :-1] * s[:, 1:]), jnp.ones((n_rays, 1), s.dtype)], axis=-1)
    cost_matrix = sign_matrix * jnp.arange(n_samples, 0, -1, dtype=s.dtype)
    values = jnp.min(cost_matrix, axis=-1)
    indices = jnp.argmin(cost_matrix, axis=-1)
    mask_sign_change = values < 0
    r = jnp.arange(n_rays)
    mask_pos_to_neg = s[r, indices] > 0
    mask = mask_sign_change & mask_pos_to_neg & in_image_mask

    d_low = starts[r, indices, 0]
    v_low = s[r, indices]
    n_low = normal[r, indices]
    idx2 = jnp.minimum(indices + 1, n_samples - 1)
    d_high = starts[r, idx2, 0]
    v_high = s[r, idx2]
    n_high = normal[r, idx2]

    denom = v_low - v_high
    # sign-preserving guard (only ever hits rows that are masked out anyway)
    tiny = jnp.where(denom < 0.0, -1e-12, 1e-12)
    denom = jnp.where(jnp.abs(denom) < 1e-12, tiny, denom)
    z = (v_low * d_high - v_high * d_low) / denom
    o = origins[r, idx2]
    dirs = directions[r, idx2]
    pts = o + dirs * z[..., None]

    pn = (v_low[..., None] * n_high - v_high[..., None] * n_low) / denom[..., None]
    pn = pn / jnp.maximum(jnp.linalg.norm(pn, axis=-1, keepdims=True), 1e-12)
    valid = jnp.abs(jnp.sum(pn * dirs, axis=-1)) > 0.1
    mask = mask & valid
    return pts, pn, mask


def get_homography_lane_dense(points, normals, c2w_in, K, image_width, image_height,
                              valid_angle_thres=0.3):
    """Per-(camera, point) homographies, produced lane-dense (n_cam, 9, n_pts)
    with the per-camera grid normalization folded into K (rows 0/1 pre-scaled)."""
    n_cam = K.shape[0]
    c2w = c2w_in.at[:, :3, 1:3].multiply(-1.0)
    K_inv = jnp.linalg.inv(K)
    w2c_r = jnp.swapaxes(c2w[:, :3, :3], 1, 2)
    w2c_t = -w2c_r @ c2w[:, :3, 3:]
    w2c = jnp.concatenate([w2c_r, w2c_t], axis=-1)

    R_rel = w2c[:, :3, :3] @ c2w[:1, :3, :3]                         # (n_cam, 3, 3)
    t_rel = w2c[:, :3, :3] @ c2w[:1, :3, 3:] + w2c[:1, :3, 3:]       # (n_cam, 3, 1)
    p_ref = w2c[0, :3, :3] @ points.T + w2c[0, :3, 3:]               # (3, n_pts)
    n_ref = w2c[0, :3, :3] @ normals.T                               # (3, n_pts)
    d = jnp.sum(n_ref * p_ref, axis=0, keepdims=True)                # (1, n_pts)

    # H[c,i,j,p] = R_rel[c,i,j] + t_rel[c,i] * n_ref[j,p] / d[p]   (points-last)
    nd = n_ref / d                                                   # (3, n_pts)
    Hp = R_rel[:, :, :, None] + t_rel[:, :, :, None] * nd[None, None, :, :]

    # Fold grid normalization into the left intrinsics: S = diag(2/(W-1), 2/(H-1), 1)
    w = image_width.reshape(n_cam).astype(jnp.float32)
    h = image_height.reshape(n_cam).astype(jnp.float32)
    S = jnp.zeros((n_cam, 3, 3), jnp.float32)
    S = S.at[:, 0, 0].set(2.0 / (w - 1.0))
    S = S.at[:, 1, 1].set(2.0 / (h - 1.0))
    S = S.at[:, 2, 2].set(1.0)
    SK = S @ K

    # H' = (S K) @ Hp @ K_inv[0], kept points-last -> directly lane-dense.
    H_lane = jnp.einsum("cia,cabp,bj->cijp", SK, Hp, K_inv[0])       # (n_cam,3,3,n_pts)
    h_lanes = H_lane.reshape(n_cam, 9, -1)                           # (n_cam, 9, n_pts)

    dir_src = c2w[:, None, :, 3] - points[None]
    dir_src = dir_src / jnp.maximum(jnp.linalg.norm(dir_src, axis=-1, keepdims=True), 1e-12)
    valid = jnp.sum(dir_src * normals[None], axis=-1) > valid_angle_thres
    p_src = w2c[:, :3, :3] @ points.T + w2c[:, :3, 3:]
    valid2 = p_src[:, 2, :] > 0.01
    return h_lanes, valid & valid2                                   # (n_cam, n_pts)


def grid_sample_bilinear_xy(image, xg, yg):
    """torch.nn.functional.grid_sample(mode='bilinear', padding_mode='zeros',
    align_corners=True) for a single image (H, W, C) with separate x/y grids
    (any shape) in [-1, 1]."""
    Himg, Wimg, _ = image.shape
    x = (xg + 1.0) * 0.5 * (Wimg - 1)
    y = (yg + 1.0) * 0.5 * (Himg - 1)
    x0 = jnp.floor(x)
    y0 = jnp.floor(y)
    x1 = x0 + 1.0
    y1 = y0 + 1.0
    wa = (x1 - x) * (y1 - y)
    wb = (x1 - x) * (y - y0)
    wc = (x - x0) * (y1 - y)
    wd = (x - x0) * (y - y0)

    def gather(xi, yi):
        xi_i = xi.astype(jnp.int32)
        yi_i = yi.astype(jnp.int32)
        inb = (xi_i >= 0) & (xi_i < Wimg) & (yi_i >= 0) & (yi_i < Himg)
        xi_c = jnp.clip(xi_i, 0, Wimg - 1)
        yi_c = jnp.clip(yi_i, 0, Himg - 1)
        vals = image[yi_c, xi_c]                                     # (..., C)
        return vals * inb[..., None].astype(vals.dtype)

    return (wa[..., None] * gather(x0, y0) + wb[..., None] * gather(x0, y1)
            + wc[..., None] * gather(x1, y0) + wd[..., None] * gather(x1, y1))


# ----------------------------------------------------------------------------
# PatchWarping module
# ----------------------------------------------------------------------------
class PatchWarpingPallas:
    def __init__(self, patch_size=5, pixel_offset=0.5, valid_angle_thres=0.3,
                 point_tile=2048):
        self.patch_size = patch_size
        self.valid_angle_thres = valid_angle_thres
        self.point_tile = point_tile
        half = patch_size // 2
        xs = jnp.arange(-half, half + 1, dtype=jnp.float32)
        gx, gy = jnp.meshgrid(xs, xs, indexing="xy")
        self.patch_coords = jnp.stack([gx, gy], axis=-1) + pixel_offset   # (P, P, 2)

    def __call__(self, starts, origins, directions, sdf, normal,
                 c2w, K, image_height, image_width, images, pix_indices):
        half = self.patch_size // 2
        in_image_mask = ((pix_indices[:, 0] > half)
                         & (pix_indices[:, 1] > half)
                         & (pix_indices[:, 0] < image_height[0] - half - 1)
                         & (pix_indices[:, 1] < image_width[0] - half - 1))

        pts, pts_normal, mask = get_intersection_points_all(
            starts, origins, directions, sdf, normal, in_image_mask)
        h_lanes, H_valid = get_homography_lane_dense(
            pts, pts_normal, c2w, K, image_width, image_height, self.valid_angle_thres)
        # Fold ray-selection mask in (all rays kept instead of boolean compaction).
        hvalid = (H_valid & mask[None, :]).astype(jnp.float32)[:, None, :]  # (n_cam,1,n_pts)

        # Patch pixel coordinates, points-last / lane-dense: (2, P2_pad, n_pts).
        n_pts = pts.shape[0]
        P2 = self.patch_size ** 2
        P2_pad = ((P2 + 7) // 8) * 8                # pad 25 -> 32 for full-tile stores
        dx = jnp.pad(self.patch_coords[..., 0].reshape(P2), (0, P2_pad - P2))
        dy = jnp.pad(self.patch_coords[..., 1].reshape(P2), (0, P2_pad - P2))
        x = pix_indices[:, 1].astype(jnp.float32)   # flip: (row, col) -> x = col
        y = pix_indices[:, 0].astype(jnp.float32)   #                    y = row
        pix = jnp.stack([dx[:, None] + x[None, :], dy[:, None] + y[None, :]], axis=0)

        # ---- Pallas hot path: warp + perspective divide + normalization + mask ----
        coords = warp_patches(h_lanes, hvalid, pix, self.point_tile)
        px = coords[:, 0, :P2, :n_pts]              # lane-dense (n_cam, P2, n_pts)
        py = coords[:, 1, :P2, :n_pts]
        # Invalid positions carry the +2.0 sentinel -> exact mask reconstruction.
        valid = (px > -1.0) & (px < 1.0) & (py > -1.0) & (py < 1.0)

        # TODO(synk): bilinear grid_sample gather (per-point dynamic image gather)
        # has no clean Pallas TPU equivalent; kept in XLA, consuming the lane-dense
        # px/py directly (it is elementwise in the grid coordinates).
        rgb = jax.vmap(grid_sample_bilinear_xy)(images.astype(jnp.float32), px, py)

        # Only the small final tensors go back to the reference (n_cam, n_pts, P2, ...)
        # layout; the big kernel outputs are never transposed.
        rgb = jnp.transpose(rgb, (0, 2, 1, 3))      # (n_cam, n_pts, P2, 3)
        valid = jnp.transpose(valid, (0, 2, 1))     # (n_cam, n_pts, P2)
        return rgb, valid


# ----------------------------------------------------------------------------
# Demo
# ----------------------------------------------------------------------------
def _look_at(eye):
    target = jnp.zeros(3, jnp.float32)
    up = jnp.array([0.0, 1.0, 0.0], jnp.float32)
    z = eye - target
    z = z / jnp.linalg.norm(z)
    x = jnp.cross(up, z)
    x = x / jnp.linalg.norm(x)
    y = jnp.cross(z, x)
    R = jnp.stack([x, y, z], axis=-1)                                    # OpenGL c2w rotation
    return jnp.concatenate([R, eye[:, None]], axis=-1)                   # (3, 4)


if __name__ == "__main__":
    key = jax.random.PRNGKey(0)
    patch_size = 5
    half = patch_size // 2
    n_cam = 3
    img_h = img_w = 32
    n_rays = 256
    n_samples = 16

    # Intrinsics (shared) and cameras on an arc around a unit sphere at origin.
    K_single = jnp.array([[30.0, 0.0, img_w / 2.0],
                          [0.0, 30.0, img_h / 2.0],
                          [0.0, 0.0, 1.0]], jnp.float32)
    K = jnp.tile(K_single[None], (n_cam, 1, 1))
    angles = jnp.array([0.0, 0.15, -0.2], jnp.float32)
    eyes = [jnp.array([4.0 * jnp.sin(a), 0.3 * a, 4.0 * jnp.cos(a)], jnp.float32)
            for a in angles]
    c2w = jnp.stack([_look_at(e) for e in eyes], axis=0)                 # (n_cam, 3, 4)

    image_height = jnp.full((n_cam, 1), img_h, jnp.int32)
    image_width = jnp.full((n_cam, 1), img_w, jnp.int32)

    k1, k2 = jax.random.split(key)
    images = jax.random.uniform(k1, (n_cam, img_h, img_w, 3), jnp.float32)

    # Pixel indices (row, col) inside the valid patch border, rays from camera 0.
    pix_indices = jax.random.randint(
        k2, (n_rays, 2), half + 1, img_h - half - 1).astype(jnp.int32)
    fx, fy, cx, cy = 30.0, 30.0, img_w / 2.0, img_h / 2.0
    u = pix_indices[:, 1].astype(jnp.float32) + 0.5
    v = pix_indices[:, 0].astype(jnp.float32) + 0.5
    dir_cam = jnp.stack([(u - cx) / fx, (v - cy) / fy, jnp.ones_like(u)], axis=-1)
    dir_cam = dir_cam / jnp.linalg.norm(dir_cam, axis=-1, keepdims=True)
    R0_cv = c2w[0, :3, :3] * jnp.array([1.0, -1.0, -1.0])                # flip y, z columns
    dirs_world = dir_cam @ R0_cv.T                                       # (n_rays, 3)
    origin0 = c2w[0, :3, 3]

    t = jnp.linspace(2.5, 5.5, n_samples, dtype=jnp.float32)
    starts = jnp.broadcast_to(t[None, :, None], (n_rays, n_samples, 1))
    origins = jnp.broadcast_to(origin0[None, None, :], (n_rays, n_samples, 3))
    directions = jnp.broadcast_to(dirs_world[:, None, :], (n_rays, n_samples, 3))
    sample_pts = origins + directions * starts                           # (R, S, 3)
    dist = jnp.linalg.norm(sample_pts, axis=-1, keepdims=True)
    sdf = dist - 1.0                                                     # unit sphere SDF
    normal = sample_pts / jnp.maximum(dist, 1e-12)

    model = PatchWarpingPallas(patch_size=patch_size, point_tile=2048)
    fwd = jax.jit(model.__call__)
    rgb, valid = fwd(starts, origins, directions, sdf, normal,
                     c2w, K, image_height, image_width, images, pix_indices)
    jax.block_until_ready((rgb, valid))

    assert rgb.shape == (n_cam, n_rays, patch_size ** 2, 3)
    assert valid.shape == (n_cam, n_rays, patch_size ** 2)
    assert bool(jnp.all(jnp.isfinite(rgb)))
    print("KERNEL_OK")
</pallas_src>

<mosaic_0001>
module attributes {stable_mosaic.version = 11 : i64} {
  func.func @_warp_kernel(%arg0: i32, %arg1: i32, %arg2: memref<1x9x256xf32, #tpu.memory_space<vmem>>, %arg3: memref<1x1x256xf32, #tpu.memory_space<vmem>>, %arg4: memref<2x32x256xf32, #tpu.memory_space<vmem>>, %arg5: memref<1x2x32x256xf32, #tpu.memory_space<vmem>>) attributes {dimension_semantics = [#tpu.dimension_semantics<parallel>, #tpu.dimension_semantics<arbitrary>], iteration_bounds = array<i64: 1, 3>, scalar_prefetch = 0 : i64, scratch_operands = 0 : i64, tpu.core_type = #tpu.core_type<tc>, window_params = [{transform_indices = @transform_0, window_bounds = array<i64: 1, 9, 256>}, {transform_indices = @transform_1, window_bounds = array<i64: 1, 1, 256>}, {transform_indices = @transform_2, window_bounds = array<i64: 2, 32, 256>}, {transform_indices = @transform_3, window_bounds = array<i64: 1, 2, 32, 256>}]} {
    %c0 = arith.constant 0 : index
    %c0_0 = arith.constant 0 : index
    %c0_1 = arith.constant 0 : index
    %0 = vector.load %arg2[%c0, %c0_0, %c0_1] : memref<1x9x256xf32, #tpu.memory_space<vmem>>, vector<1x9x256xf32>
    %1 = vector.shape_cast %0 : vector<1x9x256xf32> to vector<9x256xf32>
    %c0_2 = arith.constant 0 : index
    %c0_3 = arith.constant 0 : index
    %c0_4 = arith.constant 0 : index
    %2 = vector.load %arg4[%c0_2, %c0_3, %c0_4] : memref<2x32x256xf32, #tpu.memory_space<vmem>>, vector<1x32x256xf32>
    %3 = vector.shape_cast %2 : vector<1x32x256xf32> to vector<32x256xf32>
    %c1 = arith.constant 1 : index
    %c0_5 = arith.constant 0 : index
    %c0_6 = arith.constant 0 : index
    %4 = vector.load %arg4[%c1, %c0_5, %c0_6] : memref<2x32x256xf32, #tpu.memory_space<vmem>>, vector<1x32x256xf32>
    %5 = vector.shape_cast %4 : vector<1x32x256xf32> to vector<32x256xf32>
    %6 = vector.extract_strided_slice %1 {offsets = [0, 0], sizes = [1, 256], strides = [1, 1]} : vector<9x256xf32> to vector<1x256xf32>
    %7 = vector.broadcast %6 : vector<1x256xf32> to vector<32x256xf32>
    %8 = arith.mulf %7, %3 : vector<32x256xf32>
    %9 = vector.extract_strided_slice %1 {offsets = [1, 0], sizes = [1, 256], strides = [1, 1]} : vector<9x256xf32> to vector<1x256xf32>
    %10 = vector.broadcast %9 : vector<1x256xf32> to vector<32x256xf32>
    %11 = arith.mulf %10, %5 : vector<32x256xf32>
    %12 = arith.addf %8, %11 : vector<32x256xf32>
    %13 = vector.extract_strided_slice %1 {offsets = [2, 0], sizes = [1, 256], strides = [1, 1]} : vector<9x256xf32> to vector<1x256xf32>
    %14 = vector.broadcast %13 : vector<1x256xf32> to vector<32x256xf32>
    %15 = arith.addf %12, %14 : vector<32x256xf32>
    %16 = vector.extract_strided_slice %1 {offsets = [3, 0], sizes = [1, 256], strides = [1, 1]} : vector<9x256xf32> to vector<1x256xf32>
    %17 = vector.broadcast %16 : vector<1x256xf32> to vector<32x256xf32>
    %18 = arith.mulf %17, %3 : vector<32x256xf32>
    %19 = vector.extract_strided_slice %1 {offsets = [4, 0], sizes = [1, 256], strides = [1, 1]} : vector<9x256xf32> to vector<1x256xf32>
    %20 = vector.broadcast %19 : vector<1x256xf32> to vector<32x256xf32>
    %21 = arith.mulf %20, %5 : vector<32x256xf32>
    %22 = arith.addf %18, %21 : vector<32x256xf32>
    %23 = vector.extract_strided_slice %1 {offsets = [5, 0], sizes = [1, 256], strides = [1, 1]} : vector<9x256xf32> to vector<1x256xf32>
    %24 = vector.broadcast %23 : vector<1x256xf32> to vector<32x256xf32>
    %25 = arith.addf %22, %24 : vector<32x256xf32>
    %26 = vector.extract_strided_slice %1 {offsets = [6, 0], sizes = [1, 256], strides = [1, 1]} : vector<9x256xf32> to vector<1x256xf32>
    %27 = vector.broadcast %26 : vector<1x256xf32> to vector<32x256xf32>
    %28 = arith.mulf %27, %3 : vector<32x256xf32>
    %29 = vector.extract_strided_slice %1 {offsets = [7, 0], sizes = [1, 256], strides = [1, 1]} : vector<9x256xf32> to vector<1x256xf32>
    %30 = vector.broadcast %29 : vector<1x256xf32> to vector<32x256xf32>
    %31 = arith.mulf %30, %5 : vector<32x256xf32>
    %32 = arith.addf %28, %31 : vector<32x256xf32>
    %33 = vector.extract_strided_slice %1 {offsets = [8, 0], sizes = [1, 256], strides = [1, 1]} : vector<9x256xf32> to vector<1x256xf32>
    %34 = vector.broadcast %33 : vector<1x256xf32> to vector<32x256xf32>
    %35 = arith.addf %32, %34 : vector<32x256xf32>
    %cst = arith.constant 2.000000e-01 : f32
    %36 = vector.broadcast %cst : f32 to vector<32x256xf32>
    %37 = arith.cmpf oge, %35, %36 : vector<32x256xf32>
    %cst_7 = arith.constant 0.000000e+00 : f32
    %38 = vector.broadcast %cst_7 : f32 to vector<32x256xf32>
    %39 = arith.select %37, %35, %38 : vector<32x256xi1>, vector<32x256xf32>
    %cst_8 = arith.constant 9.99999997E-7 : f32
    %40 = vector.broadcast %cst_8 : f32 to vector<32x256xf32>
    %41 = arith.addf %39, %40 : vector<32x256xf32>
    %42 = tpu.reciprocal %41 {approx = true} : vector<32x256xf32> -> vector<32x256xf32>
    %43 = arith.mulf %41, %42 : vector<32x256xf32>
    %cst_9 = arith.constant 2.000000e+00 : f32
    %44 = vector.broadcast %cst_9 : f32 to vector<32x256xf32>
    %45 = arith.subf %44, %43 : vector<32x256xf32>
    %46 = arith.mulf %42, %45 : vector<32x256xf32>
    %47 = arith.mulf %15, %46 : vector<32x256xf32>
    %cst_10 = arith.constant 1.000000e+00 : f32
    %48 = vector.broadcast %cst_10 : f32 to vector<32x256xf32>
    %49 = arith.subf %47, %48 : vector<32x256xf32>
    %50 = arith.mulf %25, %46 : vector<32x256xf32>
    %cst_11 = arith.constant 1.000000e+00 : f32
    %51 = vector.broadcast %cst_11 : f32 to vector<32x256xf32>
    %52 = arith.subf %50, %51 : vector<32x256xf32>
    %c0_12 = arith.constant 0 : index
    %c0_13 = arith.constant 0 : index
    %c0_14 = arith.constant 0 : index
    %53 = vector.load %arg3[%c0_12, %c0_13, %c0_14] : memref<1x1x256xf32, #tpu.memory_space<vmem>>, vector<1x1x256xf32>
    %54 = vector.shape_cast %53 : vector<1x1x256xf32> to vector<1x256xf32>
    %cst_15 = arith.constant 5.000000e-01 : f32
    %55 = vector.broadcast %cst_15 : f32 to vector<1x256xf32>
    %56 = arith.cmpf ogt, %54, %55 : vector<1x256xf32>
    %cst_16 = arith.constant -1.000000e+00 : f32
    %57 = vector.broadcast %cst_16 : f32 to vector<32x256xf32>
    %58 = arith.cmpf ogt, %49, %57 : vector<32x256xf32>
    %cst_17 = arith.constant 1.000000e+00 : f32
    %59 = vector.broadcast %cst_17 : f32 to vector<32x256xf32>
    %60 = arith.cmpf olt, %49, %59 : vector<32x256xf32>
    %61 = arith.andi %58, %60 : vector<32x256xi1>
    %cst_18 = arith.constant -1.000000e+00 : f32
    %62 = vector.broadcast %cst_18 : f32 to vector<32x256xf32>
    %63 = arith.cmpf ogt, %52, %62 : vector<32x256xf32>
    %64 = arith.andi %61, %63 : vector<32x256xi1>
    %cst_19 = arith.constant 1.000000e+00 : f32
    %65 = vector.broadcast %cst_19 : f32 to vector<32x256xf32>
    %66 = arith.cmpf olt, %52, %65 : vector<32x256xf32>
    %67 = arith.andi %64, %66 : vector<32x256xi1>
    %68 = arith.andi %67, %37 : vector<32x256xi1>
    %69 = vector.broadcast %56 : vector<1x256xi1> to vector<32x256xi1>
    %70 = arith.andi %68, %69 : vector<32x256xi1>
    %cst_20 = arith.constant 2.000000e+00 : f32
    %71 = vector.broadcast %cst_20 : f32 to vector<32x256xf32>
    %72 = arith.select %70, %49, %71 : vector<32x256xi1>, vector<32x256xf32>
    %c0_21 = arith.constant 0 : index
    %c0_22 = arith.constant 0 : index
    %c0_23 = arith.constant 0 : index
    %c0_24 = arith.constant 0 : index
    %73 = vector.load %arg5[%c0_21, %c0_22, %c0_23, %c0_24] : memref<1x2x32x256xf32, #tpu.memory_space<vmem>>, vector<1x1x32x256xf32>
    %74 = vector.shape_cast %73 : vector<1x1x32x256xf32> to vector<32x256xf32>
    %75 = vector.shape_cast %72 : vector<32x256xf32> to vector<1x1x32x256xf32>
    tpu.vector_store %arg5[%c0_21, %c0_22, %c0_23, %c0_24], %75 {strides = array<i32>} : memref<1x2x32x256xf32, #tpu.memory_space<vmem>>, vector<1x1x32x256xf32>,
    %cst_25 = arith.constant 2.000000e+00 : f32
    %76 = vector.broadcast %cst_25 : f32 to vector<32x256xf32>
    %77 = arith.select %70, %52, %76 : vector<32x256xi1>, vector<32x256xf32>
    %c0_26 = arith.constant 0 : index
    %c1_27 = arith.constant 1 : index
    %c0_28 = arith.constant 0 : index
    %c0_29 = arith.constant 0 : index
    %78 = vector.load %arg5[%c0_26, %c1_27, %c0_28, %c0_29] : memref<1x2x32x256xf32, #tpu.memory_space<vmem>>, vector<1x1x32x256xf32>
    %79 = vector.shape_cast %78 : vector<1x1x32x256xf32> to vector<32x256xf32>
    %80 = vector.shape_cast %77 : vector<32x256xf32> to vector<1x1x32x256xf32>
    tpu.vector_store %arg5[%c0_26, %c1_27, %c0_28, %c0_29], %80 {strides = array<i32>} : memref<1x2x32x256xf32, #tpu.memory_space<vmem>>, vector<1x1x32x256xf32>,
    return
  }
  func.func @transform_0(%arg0: i32, %arg1: i32) -> (i32, i32, i32) {
    %c0_i32 = arith.constant 0 : i32
    %c0_i32_0 = arith.constant 0 : i32
    return %arg1, %c0_i32, %arg0 : i32, i32, i32
  }
  func.func @transform_1(%arg0: i32, %arg1: i32) -> (i32, i32, i32) {
    %c0_i32 = arith.constant 0 : i32
    %c0_i32_0 = arith.constant 0 : i32
    return %arg1, %c0_i32, %arg0 : i32, i32, i32
  }
  func.func @transform_2(%arg0: i32, %arg1: i32) -> (i32, i32, i32) {
    %c0_i32 = arith.constant 0 : i32
    %c0_i32_0 = arith.constant 0 : i32
    %c0_i32_1 = arith.constant 0 : i32
    return %c0_i32, %c0_i32_0, %arg0 : i32, i32, i32
  }
  func.func @transform_3(%arg0: i32, %arg1: i32) -> (i32, i32, i32, i32) {
    %c0_i32 = arith.constant 0 : i32
    %c0_i32_0 = arith.constant 0 : i32
    %c0_i32_1 = arith.constant 0 : i32
    return %arg1, %c0_i32, %c0_i32_0, %arg0 : i32, i32, i32, i32
  }
}

</mosaic_0001>

<bundles_post_ra>
// kernel: custom-call.11
= control target key start
LH: loop header
LB: loop body
LE: loop exit
PB: predicated region body
PF: predicated region fallthrough
CT: control target
= control target key end

     0   :  { %5 = vsyncpa [#allocation2], 0  ;;  %s937_s0 = inlined_call_operand.hbm [shape: f32[3,3,3], index: 0, kind: input, shape index: {}]   ;;  %s938_s1 = inlined_call_operand.vmem [shape: f32[3,3,3], index: 1, kind: output, shape index: {0}]   ;;  %s939_s2 = inlined_call_operand.hbm [shape: s32[3,3], index: 2, kind: output, shape index: {1}]   ;;  %s940_s3 = inlined_call_operand.vmem [shape: s32[3,3], index: 3, kind: output, shape index: {2}]  }
   0x1   :  { %7 = vsyncpa [#allocation2 + $0x1], 0 }
   0x2   :  { %8 = vsyncpa [#allocation3], 0 }
   0x3   :  { %10 = vsyncpa [#allocation3 + $0x1], 0  ;;  %s754_s12 = smov 0   ;;  %s756_s13 = smov 0  }
   0x4   :  { %s758_s14 = smov 0   ;;  %s760_s15 = smov 0  }
   0x5 LB: > { %s775_s16 = sadd.s32 4294967295, %s727_s15   ;;  %s557_s17 = sadd.s32 4294967294, %s727_s15   ;;  %s727_s15 = sphi %s760_s15, %s946_s15   ;;  %s723_s14 = sphi %s758_s14, %s945_s14   ;;  %s719_s13 = sphi %s756_s13, %s944_s13   ;;  %s715_s12 = sphi %s754_s12, %s943_s12  }
   0x6   : > { %s779_s18 = sadd.s32 1, %s727_s15   ;;  %s20_s19 = sshrl.u32 %s727_s15, 3 }
   0x7   : > { %s21_s20 = sshrl.u32 %s779_s18, 3  ;;  %s25_s21 = sadd.s32 1, %s723_s14 }
   0x8   : > { %s22_s22 = ssub.s32 %s20_s19, %s21_s20  ;;  %p35_p0 = scmp.ne.s32.totalorder %s723_s14, %s719_s13 }
   0x9   : > { %p23_p1 = scmp.eq.s32.totalorder %s22_s22, 0  ;;  %p36_p2 = scmp.eq.s32.totalorder %s775_s16, 2 }
   0xa   : > { %p41_p3 = scmp.ne.s32.totalorder %s719_s13, %s715_s12  ;;  %p42_p4 = scmp.eq.s32.totalorder %s557_s17, 2 }
   0xb   : > { %s790_s23 = scalar_select %p23_p1, %s723_s14, %s25_s21  }
   0xc   : > { %p792_p5 = por %p36_p2, %p35_p0  ;;  %p796_p6 = por %p42_p4, %p41_p3 }
   0xd   : > { %p586_p7 = scmp.lt.s32.totalorder %s727_s15, 3  ;;  %s87_s26 = sand.u32 1, %s727_s15  }
   0xe   : > { %s561_s27 = sshll.u32 %s727_s15, 2  ;;  %s560_s28 = sshll.u32 %s87_s26, 2 }
   0xf   : > { %s95_s4 = scalar_lea.hbm %s937_s0, %s561_s27  ;;  %s91_s6 = scalar_lea.vmem [#allocation1], %s560_s28 }
  0x10   : > { %s97_s5 = sshll.u32 %s95_s4, 4  ;;  %s99_s7 = sshll.u32 %s91_s6, 4  ;;  %s98_s5 = int_to_ptr.hbm [resolvable:$true] %s97_s5  ;;  %s100_s7 = int_to_ptr.vmem [resolvable:$true] %s99_s7 }
  0x11   : > { %s88_s8 = scalar_lea.sflag [#allocation2], %s87_s26  ;;  %s631_s9 = sshra.s32 %s98_s5, 4  ;;  %s632_s9 = int_to_ptr.hbm [resolvable:$true] %s631_s9 }
  0x12   : > { %s633_s10 = scalar_lea.hbm %s632_s9, 4  ;;  %s637_s19 = scalar_lea.hbm %s937_s0, 12 }
  0x13   : > { %p634_p8 = scmp.ne.s32.totalorder %s632_s9, %s633_s10  ;;  %p638_p11 = scmp.lt.s32.totalorder %s632_s9, %s937_s0 }
  0x14   : > { %p639_p12 = scmp.lt.s32.totalorder %s637_s19, %s633_s10 }
  0x15   : > { %p635_p9 = pnand %p634_p8, %p586_p7 }
  0x16   : > { %p640_p13 = por %p639_p12, %p638_p11 }
  0x17   : > { %p636_p10 = pneg %p635_p9 }
  0x19   : > { %p641_p0 = pnand %p640_p13, %p636_p10 }
  0x1b   : > { %644 = shalt.err (!%p641_p0)
}
  0x1c   : > { %579 = dma.hbm_to_vmem [thread:$0]  (%p586_p7), %s98_s5, 64, %s100_s7, %s88_s8  }
  0x1d   : > { %p562_p1 = scmp.ge.s32.totalorder %s727_s15, 1  ;;  %p104_p2 = scmp.lt.s32.totalorder %s727_s15, 4 }
  0x1f   : > { %p105_p3 = pnand %p562_p1, %p104_p2 }
  0x21   : > { %108 = sbr.rel (%p105_p3) target bundleno = 497 (0x1f1), region = 20 }
  0x26   : > { %s110_s22 = sand.u32 1, %s775_s16  }
  0x27   : > { %s111_s26 = scalar_lea.sflag [#allocation2], %s110_s22 }
  0x28   : > { %707 = dma.done.wait %s111_s26, 64  }
  0x29   : > { %708 = vsyncadd %s111_s26, 4294967232  ;;  %s819_s27 = sshll.u32 %s110_s22, 2  ;;  %s147_s28 = sand.u32 7, %s775_s16   ;;  %v152_v0 = vlaneseq  ;;  %v733_v2 = vmov 0  }
  0x2a   : > { %s825_s29 = scalar_lea.vmem [#allocation6], %s147_s28  ;;  %s130_s30 = sand.u32 1, %s719_s13  }
  0x2b   : > { %v823_v1 = vshrl.u32 %v152_v0, 7  ;;  %151 = vst [vmem:[%s825_s29] sm:$0x1] %v733_v2  ;;  %s832_s4 = sshll.u32 %s130_s30, 2  ;;  %s121_s5 = scalar_lea.vmem [#allocation1], %s819_s27 }
  0x2c   : > { %v141_v3 = vld [vmem:[%s121_s5] sm:$0xf]  ;;  %s125_s6 = scalar_lea.vmem [#allocation5], %s819_s27  ;;  %s132_s7 = scalar_lea.vmem [#allocation7], %s832_s4 }
  0x2d   : > { %156 = vst [vmem:[#allocation10] sm:$0xff] %v823_v1  ;;  %s138_s8 = scalar_lea.vmem [#allocation9], %s832_s4  ;;  %s838_s9 = scalar_lea.vmem [#allocation8], %s147_s28 }
  0x2e   : > { %142 = vst [vmem:[#allocation0] sm:$0xf] %v141_v3  ;;  %s840_s10 = smov 0  }
  0x35   : > { %v145_v4 = vld [vmem:[#allocation0] sm:$0xff] }
  0x36   : > { %146 = vst [vmem:[#allocation4] sm:$0xff] %v145_v4 }
  0x37 LB: >> { %vm172_vm0 = vcmp.lt.s32.totalorder %v823_v1, 3  ;;  %v847_v7 = vstv %s731_s10  ;;  %s213_s11 = ssub.s32 128, %s731_s10  ;;  %v219_v38 = vand.u32 127, %v152_v0  ;;  %s225_s17 = scalar_lea.vmem [#allocation4], %s731_s10  ;;  %v222_v41 = vld [vmem:[%s825_s29] ss:$0 sm:$0xff]  ;;  %s731_s10 = sphi %s840_s10, %s162_s10  }
  0x38   : >> { %vm171_vm1 = vcmp.ge.s32.totalorder %v823_v1, %v847_v7  ;;  %s231_s21 = scalar_lea.vmem [#allocation10], %s731_s10  ;;  %vm251_vm14 = vcmp.gt.s32.totalorder %v823_v1, %v847_v7  ;;  %s162_s10 = sadd.s32 1, %s731_s10  }
  0x39   : >> { %vm173_vm3 = vmand %vm171_vm1, %vm172_vm0  ;;  %vm220_vm12 = vcmp.eq.s32.totalorder %v219_v38, %v847_v7  ;;  %v233_v43 = vld [vmem:[%s231_s21] ss:$0 sm:$0xff]  ;;  %p159_p4 = scmp.ge.s32.totalorder %s162_s10, 3  }
  0x3a   : > { %s393_s26 = sshrl.u32 (%p159_p4), %s775_s16, 3  ;;  %s399_s10 = sshll.u32 (%p159_p4), %s132_s7, 4  ;;  %s400_s10 = int_to_ptr.vmem [resolvable:$true] %s399_s10 }
  0x3b   : > { %s879_s28 = sshll.u32 (%p159_p4), %s393_s26, 2  ;;  %s347_s26 = scalar_lea.sflag (%p159_p4), [#allocation3], %s130_s30 }
  0x3d   : >> { %v167_v5 = vld [vmem:[#allocation4] sm:$0xff]  ;;  %v227_v39 = vld [vmem:[%s225_s17] ss:$0 sm:$0xff] }
  0x3e   : >> { %v168_v6 = vand.u32 2147483647, %v167_v5 }
  0x40   : >> { %vm567_vm2 = vcmp.gt.f32.partialorder %v168_v6, -inf }
  0x41   : >> { %vm175_vm4 = vmand %vm173_vm3, %vm567_vm2 }
  0x42   : >> { %v176_v8 = vsel %vm175_vm4, %v823_v1, %v847_v7  ;;  %v177_v9 = vsel %vm175_vm4, %v168_v6, -inf  ;;  %vm268_vm4 = vmand %vm251_vm14, %vm220_vm12 }
  0x43   : >> { %v178_v10 = vrot.slane %v177_v9, 1  ;;  %v179_v11 = vrot.slane %v176_v8, 1 }
  0x45   : >> { %vm180_vm5 = vcmp.ge.f32.partialorder %v178_v10, %v177_v9  ;;  %v183_v12 = vrot.slane %v178_v10, 1  ;;  %v184_v13 = vrot.slane %v179_v11, 1 }
  0x46   : >> { %v181_v14 = vsel %vm180_vm5, %v178_v10, %v177_v9  ;;  %v182_v15 = vsel %vm180_vm5, %v179_v11, %v176_v8  ;;  %vm243_vm5 = vcmp.gt.s32.totalorder %v219_v38, %v847_v7 }
  0x47   : >> { %vm185_vm6 = vcmp.ge.f32.partialorder %v183_v12, %v181_v14  ;;  %v188_v16 = vrot.slane %v183_v12, 1  ;;  %v189_v17 = vrot.slane %v184_v13, 1 }
  0x48   : >> { %v186_v18 = vsel %vm185_vm6, %v183_v12, %v181_v14  ;;  %v187_v19 = vsel %vm185_vm6, %v184_v13, %v182_v15 }
  0x49   : >> { %vm190_vm7 = vcmp.ge.f32.partialorder %v188_v16, %v186_v18  ;;  %v193_v20 = vrot.slane %v188_v16, 1  ;;  %v194_v21 = vrot.slane %v189_v17, 1 }
  0x4a   : >> { %v191_v22 = vsel %vm190_vm7, %v188_v16, %v186_v18  ;;  %v192_v23 = vsel %vm190_vm7, %v189_v17, %v187_v19 }
  0x4b   : >> { %vm195_vm8 = vcmp.ge.f32.partialorder %v193_v20, %v191_v22  ;;  %v198_v24 = vrot.slane %v193_v20, 1  ;;  %v199_v25 = vrot.slane %v194_v21, 1 }
  0x4c   : >> { %v196_v26 = vsel %vm195_vm8, %v193_v20, %v191_v22  ;;  %v197_v27 = vsel %vm195_vm8, %v194_v21, %v192_v23 }
  0x4d   : >> { %vm200_vm9 = vcmp.ge.f32.partialorder %v198_v24, %v196_v26  ;;  %v203_v28 = vrot.slane %v198_v24, 1  ;;  %v204_v29 = vrot.slane %v199_v25, 1 }
  0x4e   : >> { %v201_v30 = vsel %vm200_vm9, %v198_v24, %v196_v26  ;;  %v202_v31 = vsel %vm200_vm9, %v199_v25, %v197_v27 }
  0x4f   : >> { %vm205_vm10 = vcmp.ge.f32.partialorder %v203_v28, %v201_v30  ;;  %v208_v32 = vrot.slane %v203_v28, 1  ;;  %v209_v33 = vrot.slane %v204_v29, 1 }
  0x50   : >> { %v206_v34 = vsel %vm205_vm10, %v203_v28, %v201_v30  ;;  %v207_v35 = vsel %vm205_vm10, %v204_v29, %v202_v31 }
  0x51   : >> { %vm210_vm11 = vcmp.ge.f32.partialorder %v208_v32, %v206_v34 }
  0x52   : >> { %v212_v36 = vsel %vm210_vm11, %v209_v33, %v207_v35 }
  0x53   : >> { %214 = vrot.lane.b32.xlu0 %v212_v36, %s213_s11 }
  0xc5   : >> { %v215_v37 = vpop.permute.xlu0 %214 }
  0xc6   : >> { %576 = vpush %v215_v37 }
  0xf7   : >> { %s577_s19 = spop %576 }
  0xf8   : >> { %v221_v40 = vstv %s577_s19  ;;  %s226_s20 = scalar_lea.vmem [#allocation4], %s577_s19  ;;  %s232_s22 = scalar_lea.vmem [#allocation10], %s577_s19 }
  0xf9   : >> { %v228_v42 = vld [vmem:[%s226_s20] ss:$0 sm:$0xff]  ;;  %v223_v45 = vsel %vm220_vm12, %v221_v40, %v222_v41 }
  0xfa   : >> { %v234_v44 = vld [vmem:[%s232_s22] ss:$0 sm:$0xff]  ;;  %229 = vst [vmem:[%s226_s20] sm:$0x1] %v227_v39  ;;  %vm237_vm13 = vcmp.ne.f32.partialorder %v228_v42, 0.0  ;;  %v244_v61 = vsel %vm243_vm5, %v228_v42, 0.0 }
  0xfb   : >> { %230 = vst [vmem:[%s225_s17] sm:$0x1] %v228_v42  ;;  %vm238_vm15 = vmand %vm220_vm12, %vm237_vm13  ;;  %s397_s17 = scalar_lea.hbm (%p159_p4), %s939_s2, %s879_s28 }
  0xfc   : >> { %235 = vst [vmem:[%s232_s22] sm:$0x1] %v233_v43  ;;  %v239_v46 = vsel %vm238_vm15, %v228_v42, 1.0  ;;  %s401_s19 = sshll.u32 (%p159_p4), %s397_s17, 4  ;;  %s402_s19 = int_to_ptr.hbm [resolvable:$true] %s401_s19 }
  0xfd   : >> { %236 = vst [vmem:[%s231_s21] sm:$0x1] %v234_v44  ;;  %v252_v47 = vsel %vm251_vm14, %v239_v46, 1.0  ;;  %s673_s5 = sshra.s32 (%p159_p4), %s402_s19, 4  ;;  %s674_s5 = int_to_ptr.hbm [resolvable:$true] %s673_s5 }
  0xfe   : >> { %629 = vrcp.f32 %v252_v47  ;;  %224 = vst [vmem:[%s825_s29] sm:$0x1] %v223_v45  ;;  %v264_v51 = vand.u32 2147483648, %v252_v47  ;;  %v262_v53 = vand.u32 2147483647, %v252_v47  ;;  %vm258_vm1 = vweird.f32 %v252_v47  ;;  %s571_s29 = sshll.u32 (%p159_p4), %s775_s16, 2  ;;  %s675_s16 = scalar_lea.hbm (%p159_p4), %s674_s5, 4 }
  0xff   : > { %s356_s22 = scalar_lea.vmem (%p159_p4), %s938_s1, %s571_s29  ;;  %p676_p7 = scmp.ne.s32.totalorder (%p159_p4), %s674_s5, %s675_s16 }
 0x100   : >> { %v265_v55 = vor.u32 1.1754944e-38, %v264_v51  ;;  %vm263_vm3 = vcmp.eq.f32.partialorder %v262_v53, 8.507059e+37  ;;  %s679_s29 = scalar_lea.hbm (%p159_p4), %s939_s2, 4  ;;  %p680_p10 = scmp.lt.s32.totalorder (%p159_p4), %s674_s5, %s939_s2 }
 0x101   : > { %p677_p8 = pnand (%p159_p4), %p676_p7, %p792_p5  ;;  %p681_p11 = scmp.lt.s32.totalorder (%p159_p4), %s679_s29, %s675_s16 }
 0x102   : >> { %v248_v57 = vld [vmem:[#allocation4] sm:$0xff] }
 0x103   : > { %p678_p9 = pneg (%p159_p4), %p677_p8  ;;  %p682_p12 = por (%p159_p4), %p681_p11, %p680_p10 }
 0x104   : >> { %v630_v48 = vpop.eup %629  ;;  %v275_v3 = vld [vmem:[#allocation10] sm:$0xff] (%p159_p4) }
 0x105   : >> { %v254_v49 = vmul.f32 %v630_v48, %v252_v47  ;;  %vm259_vm0 = vweird.f32 %v630_v48  ;;  %v332_v0 = vld [vmem:[#allocation6] sm:$0xf] (%p159_p4)  ;;  %p683_p13 = pnand (%p159_p4), %p682_p12, %p678_p9 }
 0x106   : >> { %vm260_vm2 = vmor %vm258_vm1, %vm259_vm0  ;;  %335 = vst [vmem:[%s132_s7] sm:$0xf] (%p159_p4), %v332_v0 }
 0x107   : >> { %v255_v50 = vsub.f32 1.0, %v254_v49 }
 0x109   : >> { %v256_v52 = vmul.f32 %v630_v48, %v255_v50 }
 0x10b   : >> { %v257_v54 = vadd.f32 %v630_v48, %v256_v52 }
 0x10d   : >> { %v261_v56 = vsel %vm260_vm2, %v630_v48, %v257_v54 }
 0x10e   : >> { %v266_v58 = vsel %vm263_vm3, %v265_v55, %v261_v56 }
 0x10f   : >> { %v267_v59 = vmul.f32 %v266_v58, %v248_v57 }
 0x111   : >> { %v269_v60 = vsel %vm268_vm4, %v267_v59, 0.0 }
 0x112   : >> { %270 = vadd.xlane.f32.xlu0 %v269_v60 }
 0x13b   : > { %291 = vxpose.xlu0.b32.start.end [1/1] (short) (narrow) (%p159_p4), %v275_v3, 8 }
 0x185   : >> { %v271_v62 = vpop.xlane.xlu0 %270 }
 0x186   : >> { %v272_v63 = vmul.f32 %v271_v62, %v244_v61  ;;  %161 = sbr.rel (!%p159_p4) target bundleno = 55 (0x37), region = 173 }
 0x188   : >> { %v273_v2 = vsub.f32 %v267_v59, %v272_v63 }
 0x18a   : >> { %274 = vst [vmem:[#allocation4] sm:$0xff] %v273_v2 }
 0x191   : > { %v326_v4 = vld [vmem:[#allocation4] sm:$0xf] }
 0x192   : > { %329 = vst [vmem:[%s125_s6] sm:$0xf] %v326_v4 }
 0x199   : > { %v373_v1 = vld [vmem:[%s125_s6] sm:$0xf] }
 0x19a   : > { %374 = vst [vmem:[%s356_s22] sm:$0xf] %v373_v1 }
 0x19b   : > { %686 = shalt.err (!%p683_p13)
}
 0x19c   : > { %580 = dma.vmem_to_hbm [thread:$0]  (%p792_p5), %s400_s10, 64, %s402_s19, %s347_s26  }
 0x19d   : > { %s410_s6 = scalar_lea.vmem (%p792_p5), %s940_s3, %s879_s28 }
 0x1df   : > { %v307_v5 = vpop.trf.xlu0 }
 0x1e0   : > { %323 = vst [vmem:[%s838_s9] sm:$0x1] %v307_v5 }
 0x1e4   : > { %407 = sbr.rel (!%p792_p5) target bundleno = 497 (0x1f1), region = 66 }
 0x1e7   : > { %v338_v6 = vld [vmem:[#allocation8] sm:$0xf] }
 0x1e8   : > { %341 = vst [vmem:[%s138_s8] sm:$0xf] %v338_v6 }
 0x1ef   : > { %v427_v7 = vld [vmem:[%s138_s8] sm:$0xf] }
 0x1f0   : > { %428 = vst [vmem:[%s410_s6] sm:$0xf] %v427_v7 }
 0x1f1 PF: > { %p587_p0 = scmp.ge.s32.totalorder %s727_s15, 2  ;;  %s456_s7 = sand.u32 1, %s715_s12  }
 0x1f2   : > { %s457_s24 = scalar_lea.sflag [#allocation3], %s456_s7 }
 0x1f3   : > { %p583_p1 = pnand %p587_p0, %p796_p6 }
 0x1f5   : > { %p584_p2 = pneg %p583_p1 }
 0x1f7   : > { %710 = dma.done.wait (%p584_p2), %s457_s24, 64  }
 0x1f8   : > { %712 = vsyncadd (%p584_p2), %s457_s24, 4294967232  ;;  %p13_p5 = scmp.ge.s32.totalorder %s779_s18, 5   ;;  %s943_s12 = smov %s719_s13 }
 0x1f9   : > { %s944_s13 = smov %s723_s14  ;;  %s945_s14 = smov %s790_s23 }
 0x1fa   : > { %s946_s15 = smov %s779_s18  ;;  %15 = sbr.rel (!%p13_p5) target bundleno = 5 (0x5), region = 184 }
 0x1ff   :  { %470 = vsyncpa [#allocation2], 1 }
 0x200   :  { %472 = vsyncpa [#allocation2 + $0x1], 1 }
 0x201   :  { %473 = vsyncpa [#allocation3], 1 }
 0x202   :  { %475 = vsyncpa [#allocation3 + $0x1], 1 }

// kernel: custom-call.13
= control target key start
LH: loop header
LB: loop body
LE: loop exit
PB: predicated region body
PF: predicated region fallthrough
CT: control target
= control target key end

     0   :  { %s373_s6 = smov 0   ;;  %s375_s7 = smov 0   ;;  %s422_s0 = inlined_call_operand.vmem [shape: f32[3,1,3,3], index: 0, kind: input, shape index: {}]   ;;  %s423_s1 = inlined_call_operand.vmem [shape: f32[3,1,3,3], index: 1, kind: output, shape index: {}]  }
   0x1   :  { %s377_s8 = smov 0  }
   0x2 LB: > { %s299_s9 = sadd.s32 4294967295, %s360_s8   ;;  %s33_s10 = sadd.s32 1, %s356_s7  ;;  %s360_s8 = sphi %s377_s8, %s7_s8   ;;  %s356_s7 = sphi %s375_s7, %s425_s7   ;;  %s352_s6 = sphi %s373_s6, %s424_s6  }
   0x3   : > { %p35_p0 = scmp.ge.s32.totalorder %s33_s10, 3  ;;  %p301_p1 = scmp.ge.s32.totalorder %s360_s8, 3 }
   0x4   : > { %s49_s11 = sand.u32 (!%p301_p1), 1, %s360_s8   ;;  %s303_s12 = sshll.u32 (!%p301_p1), %s356_s7, 2 }
   0x5   : > { %s427_s10 = smov (%p35_p0, %s33_s10), 0  ;;  %47 = sbr.rel (%p301_p1) target bundleno = 12 (0xc), region = 16 }
   0x6   : > { %s302_s13 = sshll.u32 (!%p301_p1), %s49_s11, 2  ;;  %s56_s16 = scalar_lea.vmem (!%p301_p1), %s422_s0, %s303_s12 }
   0x7   : > { %s51_s17 = scalar_lea.vmem (!%p301_p1), [#allocation1], %s302_s13 }
   0xa   : > { %v73_v0 = vld [vmem:[%s56_s16] sm:$0xf] }
   0xb   : > { %74 = vst [vmem:[%s51_s17] sm:$0xf] %v73_v0 }
   0xc PF: > { %p304_p2 = scmp.ge.s32.totalorder %s360_s8, 1  ;;  %p91_p3 = scmp.lt.s32.totalorder %s360_s8, 4 }
   0xe   : > { %p92_p4 = pnand %p304_p2, %p91_p3 }
  0x10   : > { %95 = sbr.rel (%p92_p4) target bundleno = 437 (0x1b5), region = 50 }
  0x15   : > { %s400_s18 = sand.u32 1, %s299_s9   ;;  %v113_v1 = vlaneseq  ;;  %v362_v20 = vmov -1.0   ;;  %s308_s22 = sshll.u32 %s352_s6, 2 }
  0x16   : > { %s305_s19 = sshll.u32 %s400_s18, 2  ;;  %s206_s25 = scalar_lea.vmem %s423_s1, %s308_s22 }
  0x17   : > { %s104_s20 = scalar_lea.vmem [#allocation1], %s305_s19  ;;  %v114_v3 = vand.u32 127, %v113_v1  ;;  %v117_v4 = vshrl.u32 %v113_v1, 7  ;;  %s108_s21 = scalar_lea.vmem [#allocation3], %s305_s19 }
  0x18   : > { %v111_v2 = vld [vmem:[%s104_s20] sm:$0xf] }
  0x19   : > { %112 = vst [vmem:[#allocation0] sm:$0xf] %v111_v2  ;;  %vm119_vm0 = vcmp.eq.s32.totalorder %v117_v4, %v114_v3  ;;  %vm115_vm1 = vcmp.lt.s32.totalorder %v114_v3, 3  ;;  %vm124_vm2 = vcmp.ge.s32.totalorder %v117_v4, %v114_v3  ;;  %vm151_vm8 = vcmp.eq.s32.totalorder %v114_v3, 0 }
  0x1a   : > { %vm125_vm3 = vmand %vm124_vm2, %vm115_vm1  ;;  %vm148_vm9 = vcmp.eq.s32.totalorder %v114_v3, %v117_v4  ;;  %v152_v21 = vsel %vm151_vm8, 1.0, %v362_v20  ;;  %vm159_vm10 = vcmp.eq.s32.totalorder %v114_v3, 1  ;;  %vm169_vm11 = vcmp.eq.s32.totalorder %v114_v3, 2 }
  0x1b   : > { %v153_v22 = vsel %vm148_vm9, %v152_v21, 0.0 }
  0x20   : > { %v120_v5 = vld [vmem:[#allocation0] sm:$0xff] }
  0x21   : > { %v121_v6 = vsel %vm119_vm0, %v120_v5, 0.0  ;;  %v126_v15 = vsel %vm125_vm3, %v120_v5, 0.0 }
  0x22   : > { %122 = vadd.xlane.f32.xlu0 %v121_v6 }
  0x95   : > { %v123_v7 = vpop.xlane.xlu0 %122 }
  0x96   : > { %336 = vrcp.f32 %v123_v7  ;;  %v138_v11 = vand.u32 2147483648, %v123_v7  ;;  %v136_v13 = vand.u32 2147483647, %v123_v7  ;;  %vm132_vm5 = vweird.f32 %v123_v7 }
  0x98   : > { %v139_v16 = vor.u32 1.1754944e-38, %v138_v11  ;;  %vm137_vm7 = vcmp.eq.f32.partialorder %v136_v13, 8.507059e+37 }
  0x9c   : > { %v337_v8 = vpop.eup %336 }
  0x9d   : > { %v128_v9 = vmul.f32 %v337_v8, %v123_v7  ;;  %vm133_vm4 = vweird.f32 %v337_v8 }
  0x9e   : > { %vm134_vm6 = vmor %vm132_vm5, %vm133_vm4 }
  0x9f   : > { %v129_v10 = vsub.f32 1.0, %v128_v9 }
  0xa1   : > { %v130_v12 = vmul.f32 %v337_v8, %v129_v10 }
  0xa3   : > { %v131_v14 = vadd.f32 %v337_v8, %v130_v12 }
  0xa5   : > { %v135_v17 = vsel %vm134_vm6, %v337_v8, %v131_v14 }
  0xa6   : > { %v140_v18 = vsel %vm137_vm7, %v139_v16, %v135_v17 }
  0xa7   : > { %v141_v19 = vmul.f32 %v140_v18, %v126_v15 }
  0xa9   : > { %142 = vst [vmem:[#allocation4] sm:$0xff] %v141_v19 }
  0xb0   : > { %v155_v23 = vld [vmem:[#allocation4 + $0x1] ss:$0 sm:$0xff]  ;;  %v165_v26 = vld [vmem:[#allocation4 + $0x2] ss:$0 sm:$0xff] }
  0xb1   : > { %v156_v24 = vxor.u32 2147483648, %v155_v23  ;;  %v166_v28 = vxor.u32 2147483648, %v165_v26 }
  0xb3   : > { %v160_v25 = vmul.f32 %v156_v24, %v153_v22 }
  0xb5   : > { %161 = vadd.xlane.f32.xlu0 %v160_v25 }
 0x128   : > { %v162_v27 = vpop.xlane.xlu0 %161 }
 0x129   : > { %v163_v29 = vsel %vm159_vm10, %v162_v27, %v153_v22 }
 0x12a   : > { %v170_v30 = vmul.f32 %v166_v28, %v163_v29 }
 0x12c   : > { %171 = vadd.xlane.f32.xlu1 %v170_v30 }
 0x19f   : > { %v172_v31 = vpop.xlane.xlu1 %171 }
 0x1a0   : > { %v173_v32 = vsel %vm169_vm11, %v172_v31, %v163_v29 }
 0x1a1   : > { %v188_v33 = vmul.f32 %v173_v32, %v140_v18 }
 0x1a3   : > { %v190_v34 = vsel %vm132_vm5, %v173_v32, %v188_v33 }
 0x1a4   : > { %191 = vst [vmem:[#allocation2] sm:$0xff] %v190_v34 }
 0x1ab   : > { %v194_v35 = vld [vmem:[#allocation2] sm:$0xf] }
 0x1ac   : > { %197 = vst [vmem:[%s108_s21] sm:$0xf] %v194_v35 }
 0x1b3   : > { %v223_v36 = vld [vmem:[%s108_s21] sm:$0xf] }
 0x1b4   : > { %224 = vst [vmem:[%s206_s25] sm:$0xf] %v223_v36 }
 0x1b5 PF: > { %s7_s8 = sadd.s32 1, %s360_s8   ;;  %s424_s6 = smov %s356_s7 }
 0x1b6   : > { %p4_p5 = scmp.ge.s32.totalorder %s7_s8, 5   ;;  %s425_s7 = smov %s427_s10 }
 0x1b8   :  { %6 = sbr.rel (!%p4_p5) target bundleno = 2 (0x2), region = 112 }

// kernel: custom-call.12
= control target key start
LH: loop header
LB: loop body
LE: loop exit
PB: predicated region body
PF: predicated region fallthrough
CT: control target
= control target key end

     0   :  { %s372_s6 = smov 0   ;;  %s374_s7 = smov 0   ;;  %s421_s0 = inlined_call_operand.vmem [shape: f32[3,1,3,3], index: 0, kind: input, shape index: {}]   ;;  %s422_s1 = inlined_call_operand.vmem [shape: f32[3,1,3,3], index: 1, kind: output, shape index: {}]  }
   0x1   :  { %s376_s8 = smov 0  }
   0x2 LB: > { %s298_s9 = sadd.s32 4294967295, %s359_s8   ;;  %s33_s10 = sadd.s32 1, %s355_s7  ;;  %s359_s8 = sphi %s376_s8, %s7_s8   ;;  %s355_s7 = sphi %s374_s7, %s424_s7   ;;  %s351_s6 = sphi %s372_s6, %s423_s6  }
   0x3   : > { %p35_p0 = scmp.ge.s32.totalorder %s33_s10, 3  ;;  %p300_p1 = scmp.ge.s32.totalorder %s359_s8, 3 }
   0x4   : > { %s49_s11 = sand.u32 (!%p300_p1), 1, %s359_s8   ;;  %s302_s12 = sshll.u32 (!%p300_p1), %s355_s7, 2 }
   0x5   : > { %s426_s10 = smov (%p35_p0, %s33_s10), 0  ;;  %47 = sbr.rel (%p300_p1) target bundleno = 12 (0xc), region = 16 }
   0x6   : > { %s301_s13 = sshll.u32 (!%p300_p1), %s49_s11, 2  ;;  %s56_s16 = scalar_lea.vmem (!%p300_p1), %s421_s0, %s302_s12 }
   0x7   : > { %s51_s17 = scalar_lea.vmem (!%p300_p1), [#allocation1], %s301_s13 }
   0xa   : > { %v73_v0 = vld [vmem:[%s56_s16] sm:$0xf] }
   0xb   : > { %74 = vst [vmem:[%s51_s17] sm:$0xf] %v73_v0 }
   0xc PF: > { %p303_p2 = scmp.ge.s32.totalorder %s359_s8, 1  ;;  %p91_p3 = scmp.lt.s32.totalorder %s359_s8, 4 }
   0xe   : > { %p92_p4 = pnand %p303_p2, %p91_p3 }
  0x10   : > { %95 = sbr.rel (%p92_p4) target bundleno = 437 (0x1b5), region = 50 }
  0x15   : > { %s399_s18 = sand.u32 1, %s298_s9   ;;  %v113_v1 = vlaneseq  ;;  %v361_v20 = vmov -1.0   ;;  %s307_s22 = sshll.u32 %s351_s6, 2 }
  0x16   : > { %s304_s19 = sshll.u32 %s399_s18, 2  ;;  %s205_s25 = scalar_lea.vmem %s422_s1, %s307_s22 }
  0x17   : > { %s104_s20 = scalar_lea.vmem [#allocation1], %s304_s19  ;;  %v114_v3 = vand.u32 127, %v113_v1  ;;  %v117_v4 = vshrl.u32 %v113_v1, 7  ;;  %s108_s21 = scalar_lea.vmem [#allocation3], %s304_s19 }
  0x18   : > { %v111_v2 = vld [vmem:[%s104_s20] sm:$0xf] }
  0x19   : > { %112 = vst [vmem:[#allocation0] sm:$0xf] %v111_v2  ;;  %vm119_vm0 = vcmp.eq.s32.totalorder %v117_v4, %v114_v3  ;;  %vm115_vm1 = vcmp.lt.s32.totalorder %v114_v3, 3  ;;  %vm124_vm2 = vcmp.le.s32.totalorder %v117_v4, %v114_v3  ;;  %vm151_vm8 = vcmp.eq.s32.totalorder %v114_v3, 2 }
  0x1a   : > { %vm125_vm3 = vmand %vm124_vm2, %vm115_vm1  ;;  %vm148_vm9 = vcmp.eq.s32.totalorder %v114_v3, %v117_v4  ;;  %v152_v21 = vsel %vm151_vm8, 1.0, %v361_v20  ;;  %vm159_vm10 = vcmp.eq.s32.totalorder %v114_v3, 1  ;;  %vm168_vm11 = vcmp.eq.s32.totalorder %v114_v3, 0 }
  0x1b   : > { %v153_v22 = vsel %vm148_vm9, %v152_v21, 0.0 }
  0x20   : > { %v120_v5 = vld [vmem:[#allocation0] sm:$0xff] }
  0x21   : > { %v121_v6 = vsel %vm119_vm0, %v120_v5, 0.0  ;;  %v126_v15 = vsel %vm125_vm3, %v120_v5, 0.0 }
  0x22   : > { %122 = vadd.xlane.f32.xlu0 %v121_v6 }
  0x95   : > { %v123_v7 = vpop.xlane.xlu0 %122 }
  0x96   : > { %335 = vrcp.f32 %v123_v7  ;;  %v138_v11 = vand.u32 2147483648, %v123_v7  ;;  %v136_v13 = vand.u32 2147483647, %v123_v7  ;;  %vm132_vm5 = vweird.f32 %v123_v7 }
  0x98   : > { %v139_v16 = vor.u32 1.1754944e-38, %v138_v11  ;;  %vm137_vm7 = vcmp.eq.f32.partialorder %v136_v13, 8.507059e+37 }
  0x9c   : > { %v336_v8 = vpop.eup %335 }
  0x9d   : > { %v128_v9 = vmul.f32 %v336_v8, %v123_v7  ;;  %vm133_vm4 = vweird.f32 %v336_v8 }
  0x9e   : > { %vm134_vm6 = vmor %vm132_vm5, %vm133_vm4 }
  0x9f   : > { %v129_v10 = vsub.f32 1.0, %v128_v9 }
  0xa1   : > { %v130_v12 = vmul.f32 %v336_v8, %v129_v10 }
  0xa3   : > { %v131_v14 = vadd.f32 %v336_v8, %v130_v12 }
  0xa5   : > { %v135_v17 = vsel %vm134_vm6, %v336_v8, %v131_v14 }
  0xa6   : > { %v140_v18 = vsel %vm137_vm7, %v139_v16, %v135_v17 }
  0xa7   : > { %v141_v19 = vmul.f32 %v140_v18, %v126_v15 }
  0xa9   : > { %142 = vst [vmem:[#allocation4] sm:$0xff] %v141_v19 }
  0xb0   : > { %v155_v23 = vld [vmem:[#allocation4 + $0x1] ss:$0 sm:$0xff]  ;;  %v164_v26 = vld [vmem:[#allocation4] ss:$0 sm:$0xff] }
  0xb1   : > { %v156_v24 = vxor.u32 2147483648, %v155_v23  ;;  %v165_v28 = vxor.u32 2147483648, %v164_v26 }
  0xb3   : > { %v160_v25 = vmul.f32 %v156_v24, %v153_v22 }
  0xb5   : > { %161 = vadd.xlane.f32.xlu0 %v160_v25 }
 0x128   : > { %v162_v27 = vpop.xlane.xlu0 %161 }
 0x129   : > { %v163_v29 = vsel %vm159_vm10, %v162_v27, %v153_v22 }
 0x12a   : > { %v169_v30 = vmul.f32 %v165_v28, %v163_v29 }
 0x12c   : > { %170 = vadd.xlane.f32.xlu1 %v169_v30 }
 0x19f   : > { %v171_v31 = vpop.xlane.xlu1 %170 }
 0x1a0   : > { %v172_v32 = vsel %vm168_vm11, %v171_v31, %v163_v29 }
 0x1a1   : > { %v187_v33 = vmul.f32 %v172_v32, %v140_v18 }
 0x1a3   : > { %v189_v34 = vsel %vm132_vm5, %v172_v32, %v187_v33 }
 0x1a4   : > { %190 = vst [vmem:[#allocation2] sm:$0xff] %v189_v34 }
 0x1ab   : > { %v193_v35 = vld [vmem:[#allocation2] sm:$0xf] }
 0x1ac   : > { %196 = vst [vmem:[%s108_s21] sm:$0xf] %v193_v35 }
 0x1b3   : > { %v222_v36 = vld [vmem:[%s108_s21] sm:$0xf] }
 0x1b4   : > { %223 = vst [vmem:[%s205_s25] sm:$0xf] %v222_v36 }
 0x1b5 PF: > { %s7_s8 = sadd.s32 1, %s359_s8   ;;  %s423_s6 = smov %s355_s7 }
 0x1b6   : > { %p4_p5 = scmp.ge.s32.totalorder %s7_s8, 5   ;;  %s424_s7 = smov %s426_s10 }
 0x1b8   :  { %6 = sbr.rel (!%p4_p5) target bundleno = 2 (0x2), region = 111 }

// kernel: a_call__.1
= control target key start
LH: loop header
LB: loop body
LE: loop exit
PB: predicated region body
PF: predicated region fallthrough
CT: control target
= control target key end

     0   :  { %s852_s12 = smov 0   ;;  %s854_s13 = smov 0   ;;  %s1277_s0 = inlined_call_operand.vmem [shape: f32[3,9,256], index: 0, kind: input, shape index: {}]   ;;  %s1278_s1 = inlined_call_operand.vmem [shape: f32[3,1,256], index: 1, kind: input, shape index: {}]   ;;  %s1279_s2 = inlined_call_operand.vmem [shape: f32[2,32,256], index: 2, kind: input, shape index: {}]   ;;  %s1280_s3 = inlined_call_operand.vmem [shape: f32[3,2,32,256], index: 3, kind: output, shape index: {}]  }
   0x1   :  { %s856_s14 = smov 0  }
   0x2 LB: > { %s22_s15 = sadd.s32 1, %s825_s13  ;;  %p722_p0 = scmp.ge.s32.totalorder %s829_s14, 1  ;;  %s829_s14 = sphi %s856_s14, %s13_s14   ;;  %s825_s13 = sphi %s854_s13, %s1298_s13   ;;  %s821_s12 = sphi %s852_s12, %s1297_s12  }
   0x3   : > { %p23_p1 = scmp.ge.s32.totalorder %s22_s15, 3  ;;  %p185_p2 = scmp.lt.s32.totalorder %s829_s14, 4 }
   0x5   : > { %s1300_s15 = smov (%p23_p1, %s22_s15), 0  ;;  %p186_p3 = pnand %p722_p0, %p185_p2 }
   0x6   : > { %p231_p4 = scmp.lt.s32.totalorder (!%p186_p3), %s821_s12, 2 }
   0x7   : > { %189 = sbr.rel (%p186_p3) target bundleno = 97 (0x61), region = 32 }
   0xc   : > { %s1302_s12 = smov (!%p231_p4, %s821_s12), 2  ;;  %v269_v1 = vld [vmem:[%s1279_s2] sm:$0xff]  ;;  %v270_v22 = vld [vmem:[%s1279_s2 + $0x8] sm:$0xff]  ;;  %v271_v31 = vld [vmem:[%s1279_s2 + $0x10] sm:$0xff]  ;;  %v831_v41 = vmov 0  }
   0xd   : > { %s762_s16 = sshll.u32 %s1302_s12, 5  ;;  %s725_s20 = sshll.u32 %s1302_s12, 1  ;;  %v728_v2 = vld [vmem:[%s1279_s2 + $0x40] sm:$0xff]  ;;  %v729_v23 = vld [vmem:[%s1279_s2 + $0x48] sm:$0xff]  ;;  %v730_v37 = vld [vmem:[%s1279_s2 + $0x50] sm:$0xff] }
   0xe   : > { %s876_s19 = scalar_lea.vmem %s1277_s0, %s762_s16  ;;  %s247_s27 = scalar_lea.vmem %s1278_s1, %s725_s20  ;;  %v272_v50 = vld [vmem:[%s1279_s2 + $0x18] sm:$0xff] }
   0xf   : > { %v265_v0 = vld [vmem:[%s876_s19] sm:$0xff]  ;;  %v266_v7 = vld [vmem:[%s876_s19 + $0x8] sm:$0xff]  ;;  %v905_v12 = vld [vmem:[%s876_s19 + $0x10] ss:$0 sm:$0xff]  ;;  %s763_s25 = sshll.u32 %s1302_s12, 7 }
  0x10   : > { %v889_v3 = vperm.slane %v265_v0, 6  ;;  %v891_v4 = vperm.slane %v265_v0, 7  ;;  %v893_v5 = vperm.slane %v265_v0, 0  ;;  %v895_v6 = vperm.slane %v265_v0, 1  ;;  %v488_v13 = vld [vmem:[%s247_s27] sm:$0x3]  ;;  %s1080_s4 = scalar_lea.vmem %s1280_s3, %s763_s25 }
  0x11   : > { %v898_v8 = vperm.slane %v265_v0, 3  ;;  %v900_v9 = vperm.slane %v265_v0, 4  ;;  %v907_v14 = vperm.slane %v266_v7, 0  ;;  %v909_v15 = vperm.slane %v266_v7, 1  ;;  %v948_v36 = vld [vmem:[%s876_s19 + $0x18] ss:$0 sm:$0xff] }
  0x12   : > { %v364_v10 = vmul.f32 %v889_v3, %v269_v1  ;;  %v374_v11 = vmul.f32 %v728_v2, %v891_v4  ;;  %v288_v17 = vmul.f32 %v893_v5, %v269_v1  ;;  %v298_v18 = vmul.f32 %v728_v2, %v895_v6  ;;  %v731_v55 = vld [vmem:[%s1279_s2 + $0x58] sm:$0xff] }
  0x13   : > { %v326_v19 = vmul.f32 %v898_v8, %v269_v1  ;;  %v336_v20 = vmul.f32 %v728_v2, %v900_v9  ;;  %vm489_vm0 = vcmp.gt.f32.partialorder %v488_v13, 0.5  ;;  %v289_v24 = vmul.f32 %v907_v14, %v270_v22 }
  0x14   : > { %v382_v16 = vadd.f32 %v374_v11, %v364_v10  ;;  %v299_v25 = vmul.f32 %v729_v23, %v909_v15  ;;  %v926_v26 = vperm.slane %v266_v7, 6  ;;  %v928_v27 = vperm.slane %v266_v7, 7 }
  0x15   : > { %v930_v28 = vperm.slane %v265_v0, 2  ;;  %v933_v29 = vperm.slane %v266_v7, 3  ;;  %v935_v30 = vperm.slane %v266_v7, 4  ;;  %v940_v32 = vperm.slane %v265_v0, 5 }
  0x16   : > { %v916_v21 = vadd.f32 %v905_v12, %v382_v16  ;;  %v365_v34 = vmul.f32 %v926_v26, %v270_v22  ;;  %v375_v35 = vmul.f32 %v729_v23, %v928_v27  ;;  %v306_v38 = vadd.f32 %v298_v18, %v288_v17  ;;  %v273_v16 = vld [vmem:[%s1279_s2 + $0x20] sm:$0xff] }
  0x17   : > { %v344_v39 = vadd.f32 %v336_v20, %v326_v19  ;;  %v954_v42 = vsel %vm489_vm0, 1, %v831_v41  ;;  %v307_v43 = vadd.f32 %v299_v25, %v289_v24  ;;  %v956_v44 = vperm.slane %v266_v7, 2 }
  0x18   : > { %vm400_vm1 = vcmp.ge.f32.partialorder %v916_v21, 0.2  ;;  %v383_v45 = vadd.f32 %v375_v35, %v365_v34  ;;  %v366_v46 = vmul.f32 %v889_v3, %v271_v31  ;;  %v327_v47 = vmul.f32 %v933_v29, %v270_v22  ;;  %v732_v22 = vld [vmem:[%s1279_s2 + $0x60] sm:$0xff] }
  0x19   : > { %v408_v33 = vsel %vm400_vm1, %v916_v21, 0.0  ;;  %v337_v48 = vmul.f32 %v729_v23, %v935_v30  ;;  %v376_v49 = vmul.f32 %v730_v37, %v891_v4  ;;  %v555_v51 = vperm.slane %v954_v42, 0 }
  0x1a   : > { %v416_v40 = vadd.f32 1e-06, %v408_v33  ;;  %v967_v52 = vadd.f32 %v948_v36, %v383_v45  ;;  %v290_v53 = vmul.f32 %v893_v5, %v271_v31  ;;  %v300_v54 = vmul.f32 %v730_v37, %v895_v6 }
  0x1b   : > { %v316_v56 = vadd.f32 %v930_v28, %v306_v38  ;;  %v354_v57 = vadd.f32 %v940_v32, %v344_v39  ;;  %v976_v58 = vperm.slane %v266_v7, 5  ;;  %v384_v59 = vadd.f32 %v376_v49, %v366_v46 }
  0x1c   : > { %791 = vrcp.f32 %v416_v40  ;;  %v979_v60 = vadd.f32 %v956_v44, %v307_v43  ;;  %vm401_vm2 = vcmp.ge.f32.partialorder %v967_v52, 0.2  ;;  %v556_v61 = vperm.slane %v954_v42, 1 }
  0x1d   : > { %v367_v62 = vmul.f32 %v926_v26, %v272_v50  ;;  %v345_v63 = vadd.f32 %v337_v48, %v327_v47  ;;  %v409_v0 = vsel %vm401_vm2, %v967_v52, 0.0  ;;  %v988_v1 = vadd.f32 %v905_v12, %v384_v59  ;;  %v1033_v59 = vld [vmem:[%s1279_s2 + $0x68] sm:$0xff] }
  0x1e   : > { %v377_v2 = vmul.f32 %v731_v55, %v928_v27  ;;  %v417_v7 = vadd.f32 1e-06, %v409_v0  ;;  %v308_v10 = vadd.f32 %v300_v54, %v290_v53  ;;  %v328_v11 = vmul.f32 %v898_v8, %v271_v31 }
  0x1f   : > { %v338_v13 = vmul.f32 %v730_v37, %v900_v9  ;;  %vm402_vm3 = vcmp.ge.f32.partialorder %v988_v1, 0.2  ;;  %v291_v18 = vmul.f32 %v907_v14, %v272_v50  ;;  %v301_v19 = vmul.f32 %v731_v55, %v909_v15 }
  0x20   : > { %v385_v20 = vadd.f32 %v377_v2, %v367_v62  ;;  %793 = vrcp.f32 %v417_v7  ;;  %v410_v24 = vsel %vm402_vm3, %v988_v1, 0.0  ;;  %v329_v25 = vmul.f32 %v933_v29, %v272_v50  ;;  %v274_v50 = vld [vmem:[%s1279_s2 + $0x28] sm:$0xff] }
  0x21   : > { %v418_v31 = vadd.f32 1e-06, %v410_v24  ;;  %v339_v33 = vmul.f32 %v731_v55, %v935_v30  ;;  %v368_v35 = vmul.f32 %v889_v3, %v273_v16  ;;  %v292_v38 = vmul.f32 %v893_v5, %v273_v16 }
  0x22   : > { %v792_v17 = vpop.eup %791  ;;  %v1008_v34 = vadd.f32 %v948_v36, %v385_v20  ;;  %v302_v39 = vmul.f32 %v732_v22, %v895_v6  ;;  %v355_v41 = vadd.f32 %v976_v58, %v345_v63  ;;  %v346_v43 = vadd.f32 %v338_v13, %v328_v11 }
  0x23   : > { %v432_v23 = vmul.f32 %v792_v17, %v416_v40  ;;  %v378_v40 = vmul.f32 %v732_v22, %v891_v4  ;;  %795 = vrcp.f32 %v418_v31  ;;  %vm1016_vm5 = vcmp.eq.s32.totalorder %v555_v51, 1 }
  0x24   : > { %vm403_vm4 = vcmp.ge.f32.partialorder %v1008_v34, 0.2  ;;  %v1021_v47 = vadd.f32 %v930_v28, %v308_v10  ;;  %v309_v53 = vadd.f32 %v301_v19, %v291_v18  ;;  %v347_v54 = vadd.f32 %v339_v33, %v329_v25 }
  0x25   : > { %v440_v37 = vsub.f32 2.0, %v432_v23  ;;  %v411_v48 = vsel %vm403_vm4, %v1008_v34, 0.0  ;;  %v386_v49 = vadd.f32 %v378_v40, %v368_v35  ;;  %v330_v51 = vmul.f32 %v898_v8, %v273_v16 }
  0x26   : > { %v419_v55 = vadd.f32 1e-06, %v411_v48  ;;  %v794_v62 = vpop.eup %793  ;;  %v310_v2 = vadd.f32 %v302_v39, %v292_v38  ;;  %v340_v13 = vmul.f32 %v732_v22, %v900_v9  ;;  %v356_v20 = vadd.f32 %v940_v32, %v346_v43 }
  0x27   : > { %v448_v45 = vmul.f32 %v792_v17, %v440_v37  ;;  %v1036_v10 = vadd.f32 %v905_v12, %v386_v49  ;;  %v433_v11 = vmul.f32 %v794_v62, %v417_v7  ;;  %v369_v17 = vmul.f32 %v926_v26, %v274_v50  ;;  %v1062_v37 = vld [vmem:[%s1279_s2 + $0x30] sm:$0xff] }
  0x28   : > { %797 = vrcp.f32 %v419_v55  ;;  %v319_v7 = vadd.f32 %v956_v44, %v309_v53  ;;  %vm1055_vm12 = vcmp.eq.s32.totalorder %v556_v61, 1  ;;  %v357_v38 = vadd.f32 %v976_v58, %v347_v54  ;;  %v1072_v61 = vld [vmem:[%s1279_s2 + $0x70] sm:$0xff] }
  0x29   : > { %v456_v63 = vmul.f32 %v448_v45, %v316_v56  ;;  %v472_v0 = vmul.f32 %v448_v45, %v354_v57  ;;  %vm1282_vm6 = vcmp.ge.f32.partialorder %v1036_v10, 0.2  ;;  %v379_v56 = vmul.f32 %v1033_v59, %v928_v27  ;;  %v796_v57 = vpop.eup %795 }
  0x2a   : > { %v441_v19 = vsub.f32 2.0, %v433_v11  ;;  %v412_v22 = vsel %vm1282_vm6, %v1036_v10, 0.0  ;;  %v434_v25 = vmul.f32 %v796_v57, %v418_v31  ;;  %v1066_v39 = vadd.f32 %v930_v28, %v310_v2 }
  0x2b   : > { %v736_v16 = vadd.f32 -1.0, %v456_v63  ;;  %v1040_v18 = vadd.f32 -1.0, %v472_v0  ;;  %v420_v33 = vadd.f32 1e-06, %v412_v22  ;;  %v387_v35 = vadd.f32 %v379_v56, %v369_v17 }
  0x2c   : > { %v449_v23 = vmul.f32 %v794_v62, %v441_v19  ;;  %v348_v40 = vadd.f32 %v340_v13, %v330_v51  ;;  %v293_v42 = vmul.f32 %v907_v14, %v274_v50  ;;  %v442_v48 = vsub.f32 2.0, %v434_v25 }
  0x2d   : > { %vm490_vm7 = vcmp.gt.f32.partialorder %v736_v16, -1.0  ;;  %vm498_vm8 = vcmp.lt.f32.partialorder %v736_v16, 1.0  ;;  %vm514_vm9 = vcmp.gt.f32.partialorder %v1040_v18, -1.0  ;;  %vm530_vm10 = vcmp.lt.f32.partialorder %v1040_v18, 1.0 }
  0x2e   : > { %vm506_vm11 = vmand %vm490_vm7, %vm498_vm8  ;;  %v798_v31 = vpop.eup %797  ;;  %v457_v43 = vmul.f32 %v449_v23, %v979_v60  ;;  %v473_v45 = vmul.f32 %v449_v23, %v355_v41  ;;  %799 = vrcp.f32 %v420_v33  ;;  %v303_v54 = vmul.f32 %v1033_v59, %v909_v15 }
  0x2f   : > { %vm522_vm13 = vmand %vm506_vm11, %vm514_vm9  ;;  %v435_v53 = vmul.f32 %v798_v31, %v419_v55  ;;  %v1091_v60 = vadd.f32 %v948_v36, %v387_v35  ;;  %v370_v41 = vmul.f32 %v889_v3, %v1062_v37  ;;  %v450_v62 = vmul.f32 %v796_v57, %v442_v48 }
  0x30   : > { %vm538_vm14 = vmand %vm522_vm13, %vm530_vm10  ;;  %v737_v21 = vadd.f32 -1.0, %v457_v43  ;;  %v1099_v51 = vadd.f32 -1.0, %v473_v45  ;;  %v380_v55 = vmul.f32 %v1072_v61, %v891_v4  ;;  %v331_v3 = vmul.f32 %v933_v29, %v274_v50  ;;  %v1155_v43 = vld [vmem:[%s1279_s2 + $0x78] sm:$0xff] }
  0x31   : > { %vm1084_vm15 = vmand %vm538_vm14, %vm400_vm1  ;;  %v443_v0 = vsub.f32 2.0, %v435_v53  ;;  %vm1281_vm1 = vcmp.ge.f32.partialorder %v1091_v60, 0.2  ;;  %v458_v4 = vmul.f32 %v450_v62, %v1021_v47  ;;  %v474_v2 = vmul.f32 %v450_v62, %v356_v20 }
  0x32   : > { %vm559_vm0 = vmand %vm1084_vm15, %vm1016_vm5  ;;  %vm491_vm7 = vcmp.gt.f32.partialorder %v737_v21, -1.0  ;;  %vm499_vm8 = vcmp.lt.f32.partialorder %v737_v21, 1.0  ;;  %vm515_vm9 = vcmp.gt.f32.partialorder %v1099_v51, -1.0  ;;  %vm531_vm10 = vcmp.lt.f32.partialorder %v1099_v51, 1.0 }
  0x33   : > { %v567_v63 = vsel %vm559_vm0, %v736_v16, 2.0  ;;  %vm507_vm11 = vmand %vm491_vm7, %vm499_vm8  ;;  %v451_v11 = vmul.f32 %v798_v31, %v443_v0  ;;  %v413_v13 = vsel %vm1281_vm1, %v1091_v60, 0.0  ;;  %v311_v50 = vadd.f32 %v303_v54, %v293_v42  ;;  %v1150_v31 = vld [vmem:[%s1279_s2 + $0x38] sm:$0xff] }
  0x34   : > { %575 = vst [vmem:[%s1080_s4] sm:$0xff] %v567_v63  ;;  %v800_v17 = vpop.eup %799  ;;  %vm523_vm13 = vmand %vm507_vm11, %vm515_vm9  ;;  %v341_v16 = vmul.f32 %v1033_v59, %v935_v30  ;;  %v421_v56 = vadd.f32 1e-06, %v413_v13  ;;  %v388_v57 = vadd.f32 %v380_v55, %v370_v41  ;;  %v738_v19 = vadd.f32 -1.0, %v458_v4 }
  0x35   : > { %vm539_vm14 = vmand %vm523_vm13, %vm531_vm10  ;;  %v1119_v22 = vadd.f32 -1.0, %v474_v2  ;;  %v459_v23 = vmul.f32 %v451_v11, %v319_v7  ;;  %v475_v47 = vmul.f32 %v451_v11, %v357_v38  ;;  %v358_v25 = vadd.f32 %v940_v32, %v348_v40 }
  0x36   : > { %vm1123_vm7 = vmand %vm539_vm14, %vm401_vm2  ;;  %v436_v35 = vmul.f32 %v800_v17, %v420_v33  ;;  %801 = vrcp.f32 %v421_v56  ;;  %v1129_v59 = vadd.f32 %v905_v12, %v388_v57  ;;  %vm492_vm9 = vcmp.gt.f32.partialorder %v738_v19, -1.0 }
  0x37   : > { %vm560_vm8 = vmand %vm1123_vm7, %vm1055_vm12  ;;  %vm500_vm10 = vcmp.lt.f32.partialorder %v738_v19, 1.0  ;;  %vm516_vm11 = vcmp.gt.f32.partialorder %v1119_v22, -1.0  ;;  %vm532_vm2 = vcmp.lt.f32.partialorder %v1119_v22, 1.0  ;;  %v739_v12 = vadd.f32 -1.0, %v459_v23 }
  0x38   : > { %v568_v52 = vsel %vm560_vm8, %v737_v21, 2.0  ;;  %vm508_vm13 = vmand %vm492_vm9, %vm500_vm10  ;;  %v747_v7 = vadd.f32 -1.0, %v475_v47  ;;  %v444_v33 = vsub.f32 2.0, %v436_v35  ;;  %v321_v38 = vadd.f32 %v956_v44, %v311_v50 }
  0x39   : > { %576 = vst [vmem:[%s1080_s4 + $0x8] sm:$0xff] %v568_v52  ;;  %vm524_vm14 = vmand %vm508_vm13, %vm516_vm11  ;;  %v349_v40 = vadd.f32 %v341_v16, %v331_v3  ;;  %v294_v42 = vmul.f32 %v893_v5, %v1062_v37  ;;  %vm406_vm1 = vcmp.ge.f32.partialorder %v1129_v59, 0.2  ;;  %vm493_vm10 = vcmp.gt.f32.partialorder %v739_v12, -1.0 }
  0x3a   : > { %vm540_vm9 = vmand %vm524_vm14, %vm532_vm2  ;;  %vm501_vm11 = vcmp.lt.f32.partialorder %v739_v12, 1.0  ;;  %v304_v45 = vmul.f32 %v1072_v61, %v895_v6  ;;  %v332_v5 = vmul.f32 %v898_v8, %v1062_v37  ;;  %vm517_vm6 = vcmp.gt.f32.partialorder %v747_v7, -1.0 }
  0x3b   : > { %vm1163_vm13 = vmand %vm540_vm9, %vm402_vm3  ;;  %v452_v53 = vmul.f32 %v800_v17, %v444_v33  ;;  %v342_v54 = vmul.f32 %v1072_v61, %v900_v9  ;;  %v414_v41 = vsel %vm406_vm1, %v1129_v59, 0.0  ;;  %vm533_vm3 = vcmp.lt.f32.partialorder %v747_v7, 1.0 }
  0x3c   : > { %v802_v6 = vpop.eup %801  ;;  %vm561_vm2 = vmand %vm1163_vm13, %vm1016_vm5  ;;  %v422_v8 = vadd.f32 1e-06, %v414_v41  ;;  %v371_v1 = vmul.f32 %v926_v26, %v1150_v31  ;;  %v381_v37 = vmul.f32 %v1155_v43, %v928_v27  ;;  %v359_v26 = vadd.f32 %v976_v58, %v349_v40 }
  0x3d   : > { %v569_v9 = vsel %vm561_vm2, %v738_v19, 2.0  ;;  %vm509_vm14 = vmand %vm493_vm10, %vm501_vm11  ;;  %v460_v61 = vmul.f32 %v452_v53, %v1066_v39  ;;  %v476_v21 = vmul.f32 %v452_v53, %v358_v25  ;;  %v437_v62 = vmul.f32 %v802_v6, %v421_v56 }
  0x3e   : > { %577 = vst [vmem:[%s1080_s4 + $0x10] sm:$0xff] %v569_v9  ;;  %vm525_vm9 = vmand %vm509_vm14, %vm517_vm6  ;;  %803 = vrcp.f32 %v422_v8  ;;  %v389_v27 = vadd.f32 %v381_v37, %v371_v1  ;;  %v583_v55 = vsel %vm559_vm0, %v1040_v18, 2.0  ;;  %v584_v3 = vsel %vm560_vm8, %v1099_v51, 2.0 }
  0x3f   : > { %vm541_vm10 = vmand %vm525_vm9, %vm533_vm3  ;;  %v740_v39 = vadd.f32 -1.0, %v460_v61  ;;  %v748_v63 = vadd.f32 -1.0, %v476_v21  ;;  %v445_v0 = vsub.f32 2.0, %v437_v62  ;;  %752 = vst [vmem:[%s1080_s4 + $0x40] sm:$0xff] %v583_v55  ;;  %v312_v18 = vadd.f32 %v304_v45, %v294_v42 }
  0x40   : > { %vm1207_vm6 = vmand %vm541_vm10, %vm403_vm4  ;;  %v350_v4 = vadd.f32 %v342_v54, %v332_v5  ;;  %v1212_v2 = vadd.f32 %v948_v36, %v389_v27  ;;  %753 = vst [vmem:[%s1080_s4 + $0x48] sm:$0xff] %v584_v3  ;;  %v585_v51 = vsel %vm561_vm2, %v1119_v22, 2.0  ;;  %vm1295_vm14 = vcmp.ge.f32.partialorder %v1036_v10, 0.2 }
  0x41   : > { %vm562_vm4 = vmand %vm1207_vm6, %vm1055_vm12  ;;  %vm494_vm15 = vcmp.gt.f32.partialorder %v740_v39, -1.0  ;;  %vm502_vm0 = vcmp.lt.f32.partialorder %v740_v39, 1.0  ;;  %vm518_vm7 = vcmp.gt.f32.partialorder %v748_v63, -1.0  ;;  %vm534_vm8 = vcmp.lt.f32.partialorder %v748_v63, 1.0  ;;  %754 = vst [vmem:[%s1080_s4 + $0x50] sm:$0xff] %v585_v51 }
  0x42   : > { %v570_v36 = vsel %vm562_vm4, %v739_v12, 2.0  ;;  %vm510_vm11 = vmand %vm494_vm15, %vm502_vm0  ;;  %v453_v34 = vmul.f32 %v802_v6, %v445_v0  ;;  %vm407_vm3 = vcmp.ge.f32.partialorder %v1212_v2, 0.2  ;;  %v586_v11 = vsel %vm562_vm4, %v747_v7, 2.0 }
  0x43   : > { %578 = vst [vmem:[%s1080_s4 + $0x18] sm:$0xff] %v570_v36  ;;  %vm526_vm13 = vmand %vm510_vm11, %vm518_vm7  ;;  %v415_v13 = vsel %vm407_vm3, %v1212_v2, 0.0  ;;  %v322_v56 = vadd.f32 %v930_v28, %v312_v18  ;;  %v360_v19 = vadd.f32 %v940_v32, %v350_v4  ;;  %v295_v23 = vmul.f32 %v907_v14, %v1150_v31 }
  0x44   : > { %v804_v17 = vpop.eup %803  ;;  %vm542_vm2 = vmand %vm526_vm13, %vm534_vm8  ;;  %v461_v50 = vmul.f32 %v453_v34, %v321_v38  ;;  %v477_v16 = vmul.f32 %v453_v34, %v359_v26  ;;  %v423_v57 = vadd.f32 1e-06, %v415_v13  ;;  %755 = vst [vmem:[%s1080_s4 + $0x58] sm:$0xff] %v586_v11  ;;  %v305_v47 = vmul.f32 %v1155_v43, %v909_v15 }
  0x45   : > { %vm550_vm9 = vmand %vm542_vm2, %vm1295_vm14  ;;  %v438_v22 = vmul.f32 %v804_v17, %v422_v8  ;;  %v333_v25 = vmul.f32 %v933_v29, %v1150_v31  ;;  %v343_v32 = vmul.f32 %v1155_v43, %v935_v30  ;;  %vm1296_vm13 = vcmp.ge.f32.partialorder %v1091_v60, 0.2 }
  0x46   : > { %vm563_vm10 = vmand %vm550_vm9, %vm1016_vm5  ;;  %v741_v28 = vadd.f32 -1.0, %v461_v50  ;;  %v749_v20 = vadd.f32 -1.0, %v477_v16  ;;  %805 = vrcp.f32 %v423_v57  ;;  %v313_v7 = vadd.f32 %v305_v47, %v295_v23 }
  0x47   : > { %v571_v10 = vsel %vm563_vm10, %v740_v39, 2.0  ;;  %v446_v35 = vsub.f32 2.0, %v438_v22  ;;  %v587_v52 = vsel %vm563_vm10, %v748_v63, 2.0  ;;  %v351_v30 = vadd.f32 %v343_v32, %v333_v25 }
  0x48   : > { %579 = vst [vmem:[%s1080_s4 + $0x20] sm:$0xff] %v571_v10  ;;  %vm495_vm6 = vcmp.gt.f32.partialorder %v741_v28, -1.0  ;;  %vm503_vm4 = vcmp.lt.f32.partialorder %v741_v28, 1.0  ;;  %vm519_vm15 = vcmp.gt.f32.partialorder %v749_v20, -1.0  ;;  %vm535_vm0 = vcmp.lt.f32.partialorder %v749_v20, 1.0 }
  0x49   : > { %vm511_vm7 = vmand %vm495_vm6, %vm503_vm4  ;;  %v454_v14 = vmul.f32 %v804_v17, %v446_v35  ;;  %756 = vst [vmem:[%s1080_s4 + $0x60] sm:$0xff] %v587_v52  ;;  %v323_v60 = vadd.f32 %v956_v44, %v313_v7  ;;  %v361_v43 = vadd.f32 %v976_v58, %v351_v30 }
  0x4a   : > { %vm527_vm8 = vmand %vm511_vm7, %vm519_vm15 }
  0x4b   : > { %vm543_vm11 = vmand %vm527_vm8, %vm535_vm0  ;;  %v462_v15 = vmul.f32 %v454_v14, %v322_v56  ;;  %v478_v29 = vmul.f32 %v454_v14, %v360_v19 }
  0x4c   : > { %v806_v12 = vpop.eup %805  ;;  %vm551_vm2 = vmand %vm543_vm11, %vm1296_vm13 }
  0x4d   : > { %vm564_vm14 = vmand %vm551_vm2, %vm1055_vm12  ;;  %v742_v33 = vadd.f32 -1.0, %v462_v15  ;;  %v750_v38 = vadd.f32 -1.0, %v478_v29  ;;  %v439_v40 = vmul.f32 %v806_v12, %v423_v57 }
  0x4e   : > { %v572_v42 = vsel %vm564_vm14, %v741_v28, 2.0  ;;  %v588_v31 = vsel %vm564_vm14, %v749_v20, 2.0 }
  0x4f   : > { %580 = vst [vmem:[%s1080_s4 + $0x28] sm:$0xff] %v572_v42  ;;  %vm496_vm9 = vcmp.gt.f32.partialorder %v742_v33, -1.0  ;;  %vm504_vm10 = vcmp.lt.f32.partialorder %v742_v33, 1.0  ;;  %vm520_vm6 = vcmp.gt.f32.partialorder %v750_v38, -1.0  ;;  %vm536_vm4 = vcmp.lt.f32.partialorder %v750_v38, 1.0 }
  0x50   : > { %vm512_vm15 = vmand %vm496_vm9, %vm504_vm10  ;;  %v447_v45 = vsub.f32 2.0, %v439_v40  ;;  %757 = vst [vmem:[%s1080_s4 + $0x68] sm:$0xff] %v588_v31 }
  0x51   : > { %vm528_vm0 = vmand %vm512_vm15, %vm520_vm6 }
  0x52   : > { %vm544_vm7 = vmand %vm528_vm0, %vm536_vm4  ;;  %v455_v5 = vmul.f32 %v806_v12, %v447_v45 }
  0x53   : > { %vm552_vm8 = vmand %vm544_vm7, %vm406_vm1 }
  0x54   : > { %vm565_vm11 = vmand %vm552_vm8, %vm1016_vm5  ;;  %v463_v48 = vmul.f32 %v455_v5, %v323_v60  ;;  %v479_v53 = vmul.f32 %v455_v5, %v361_v43 }
  0x55   : > { %v573_v54 = vsel %vm565_vm11, %v742_v33, 2.0  ;;  %v589_v41 = vsel %vm565_vm11, %v750_v38, 2.0 }
  0x56   : > { %581 = vst [vmem:[%s1080_s4 + $0x30] sm:$0xff] %v573_v54  ;;  %v743_v44 = vadd.f32 -1.0, %v463_v48  ;;  %v751_v58 = vadd.f32 -1.0, %v479_v53 }
  0x57   : > { %758 = vst [vmem:[%s1080_s4 + $0x70] sm:$0xff] %v589_v41 }
  0x58   : > { %vm497_vm13 = vcmp.gt.f32.partialorder %v743_v44, -1.0  ;;  %vm505_vm2 = vcmp.lt.f32.partialorder %v743_v44, 1.0  ;;  %vm521_vm14 = vcmp.gt.f32.partialorder %v751_v58, -1.0  ;;  %vm537_vm9 = vcmp.lt.f32.partialorder %v751_v58, 1.0 }
  0x59   : > { %vm513_vm10 = vmand %vm497_vm13, %vm505_vm2 }
  0x5a   : > { %vm529_vm6 = vmand %vm513_vm10, %vm521_vm14 }
  0x5b   : > { %vm545_vm1 = vmand %vm529_vm6, %vm537_vm9 }
  0x5c   : > { %vm553_vm5 = vmand %vm545_vm1, %vm407_vm3 }
  0x5d   : > { %vm566_vm4 = vmand %vm553_vm5, %vm1055_vm12 }
  0x5e   : > { %v574_v46 = vsel %vm566_vm4, %v743_v44, 2.0  ;;  %v590_v59 = vsel %vm566_vm4, %v751_v58, 2.0 }
  0x5f   : > { %582 = vst [vmem:[%s1080_s4 + $0x38] sm:$0xff] %v574_v46 }
  0x60   : > { %759 = vst [vmem:[%s1080_s4 + $0x78] sm:$0xff] %v590_v59 }
  0x61 PF: > { %s13_s14 = sadd.s32 1, %s829_s14   ;;  %s1297_s12 = smov %s825_s13 }
  0x62   : > { %p10_p5 = scmp.ge.s32.totalorder %s13_s14, 5   ;;  %s1298_s13 = smov %s1300_s15 }
  0x64   :  { %12 = sbr.rel (!%p10_p5) target bundleno = 2 (0x2), region = 70 }

</bundles_post_ra>
